<compile_context>
chip_gen: v7x
topology: tpu7x:2x2x1
jax: 0.10.0
libtpu: 0.0.40
codegen_flags: <defaults>
</compile_context>

<pallas_src>
import functools
import math

import jax
import jax.numpy as jnp
from jax import lax
from jax.experimental import pallas as pl
from jax.experimental.pallas import tpu as pltpu

LN_EPS = 1e-5
_INV_SQRT2 = 0.7071067811865476
_LANE = 128
_SUBLANE = 8
_RCHUNK = 16                      # row-chunk for the depthwise conv
_VMEM_LIMIT = 48 * 1024 * 1024    # fits v7x (64 MiB/TC) and v5e/v6e (128 MiB)


def _round_up(n, m):
    return ((n + m - 1) // m) * m


def _pad_to(x, shape):
    pads = [(0, s - d) for d, s in zip(x.shape, shape)]
    if all(p == (0, 0) for p in pads):
        return x
    return jnp.pad(x, pads)


def _gelu_exact(x):
    # torch F.gelu / nn.GELU default (erf formulation)
    return x * 0.5 * (1.0 + lax.erf(x * _INV_SQRT2))


# ---------------------------------------------------------------------------
# Fused Pallas kernel: input proj -> L residual layers -> final LN -> out proj
# grid = (B, n_time_tiles, num_layers); activation tile stays resident in VMEM
# across the whole layer stack (output written only at the last layer).
# ---------------------------------------------------------------------------
def _lynxnet_kernel(x_hbm, cond_hbm, dproj_ref, inw_ref, inb_ref,
                    wc_ref, w1a_ref, w1b_ref, w2_ref, wdw_ref,
                    cvec_ref, ivec_ref, ng_ref, nbeta_ref, outw_ref, outb_ref,
                    o_ref,
                    xraw_ref, condw_ref, xw_ref, zp_ref, act_ref, sem_ref,
                    *, tq, tw, halo, pada, t_true, c_true, ksize, num_layers,
                    front_cond_inject, apply_gelu, activation):
    b = pl.program_id(0)
    t = pl.program_id(1)
    l = pl.program_id(2)
    pad = ksize // 2
    i_p = zp_ref.shape[1]
    inv_c = 1.0 / float(c_true)

    def mm(a, w):
        # bf16 (or f32) MXU inputs, f32 accumulation
        if a.dtype != w.dtype:
            a = a.astype(w.dtype)
        return jnp.dot(a, w, preferred_element_type=jnp.float32)

    def layernorm(h, g, beta):
        # single pass: padded lanes of h are exactly zero by construction
        mu = jnp.sum(h, axis=-1, keepdims=True) * inv_c
        ms = jnp.sum(h * h, axis=-1, keepdims=True) * inv_c
        var = jnp.maximum(ms - mu * mu, 0.0)
        return (h - mu) * lax.rsqrt(var + LN_EPS) * g + beta

    # --- layer 0: DMA the halo'd raw-input / conditioner windows, compute the
    #     input projection into the resident activation scratch, and zero the
    #     depthwise-conv pad edges once per tile. ---
    @pl.when(l == 0)
    def _load_and_project():
        row0 = pl.multiple_of(t * tq, _SUBLANE)
        cp_x = pltpu.make_async_copy(x_hbm.at[b, pl.ds(row0, tw), :],
                                     xraw_ref, sem_ref.at[0])
        cp_c = pltpu.make_async_copy(cond_hbm.at[b, pl.ds(row0, tw), :],
                                     condw_ref, sem_ref.at[1])
        cp_x.start()
        cp_c.start()
        cp_x.wait()
        cp_c.wait()
        xin = mm(xraw_ref[...], inw_ref[...]) + inb_ref[...]
        if apply_gelu:
            xin = _gelu_exact(xin)
        xw_ref[...] = xin
        zp_ref[pl.ds(0, pada), :] = jnp.zeros((pada, i_p), jnp.float32)
        zp_ref[pl.ds(pada + tw, pada), :] = jnp.zeros((pada, i_p), jnp.float32)

    x = xw_ref[...]                                        # [tw, C_pad] f32

    # conditioner projection (1x1 conv) + add
    x_inj = x + mm(condw_ref[...], wc_ref[...]) + cvec_ref[0:1, :]
    res = x_inj if front_cond_inject else x

    # diffusion projection was hoisted to the wrapper -> broadcast add
    h = x_inj + dproj_ref[...]                             # [1, C_pad]

    # LayerNorm over channels
    hn = layernorm(h, cvec_ref[1:2, :], cvec_ref[2:3, :])

    # pointwise conv 1 as two lane-dense matmuls + SwiGLU
    out_half = mm(hn, w1a_ref[...]) + ivec_ref[0:1, :]
    gate = mm(hn, w1b_ref[...]) + ivec_ref[1:2, :]
    z = out_half * (gate * jax.nn.sigmoid(gate))           # [tw, I_pad]

    # zero rows outside the true sequence: exact 'same' zero padding and keeps
    # halo / end-padding rows from polluting valid rows through the dw conv
    grow = lax.broadcasted_iota(jnp.int32, (tw, 1), 0) + (t * tq - halo)
    rmask = jnp.logical_and(grow >= 0, grow < t_true)
    zp_ref[pl.ds(pada, tw), :] = jnp.where(rmask, z, 0.0)

    # depthwise conv along time, chunked over 16-row groups so the tap
    # accumulator stays in registers and is stored once per chunk
    wdw = wdw_ref[...]                                     # [K, I_pad] f32
    bdw = ivec_ref[2:3, :]
    alpha = ivec_ref[3:4, :]
    base = pada - pad

    @pl.loop(0, tw // _RCHUNK)
    def _dwconv(ci):
        r0 = pl.multiple_of(ci * _RCHUNK, _RCHUNK)
        a = zp_ref[pl.ds(r0 + base, _RCHUNK), :] * wdw[0:1, :]
        for k in range(1, ksize):                          # static unroll
            a = a + zp_ref[pl.ds(r0 + base + k, _RCHUNK), :] * wdw[k:k + 1, :]
        a = a + bdw
        if activation == 'PReLU':
            a = jnp.where(a >= 0.0, a, alpha * a)
        elif activation == 'SiLU':
            a = a * jax.nn.sigmoid(a)
        else:  # ReLU
            a = jnp.maximum(a, 0.0)
        act_ref[pl.ds(r0, _RCHUNK), :] = a

    # pointwise conv 2 + residual; result stays resident for the next layer
    new_x = mm(act_ref[...], w2_ref[...]) + cvec_ref[3:4, :] + res
    xw_ref[...] = new_x

    # --- last layer: fused final LayerNorm + output projection + store ---
    @pl.when(l == num_layers - 1)
    def _final():
        xo = new_x[halo:halo + tq, :]
        hno = layernorm(xo, ng_ref[...], nbeta_ref[...])
        y = mm(hno, outw_ref[...]) + outb_ref[...]
        o_ref[...] = y.astype(o_ref.dtype)


def _lynxnet_pallas(x_ext, cond_ext, dproj, in_w, in_b, wc, w1a, w1b, w2, wdw,
                    cvec, ivec, norm_g, norm_b, out_w, out_b, *,
                    tq, halo, t_true, c_true, ksize, front_cond_inject,
                    apply_gelu, activation):
    B, T_ext, M_pad = x_ext.shape
    H_pad = cond_ext.shape[-1]
    C_pad = in_w.shape[1]
    I_pad = w1a.shape[-1]
    L = wc.shape[0]
    T_pad = T_ext - 2 * halo
    n_t = T_pad // tq
    tw = tq + 2 * halo
    pad = ksize // 2
    pada = _round_up(pad, _SUBLANE)
    assert tw % _RCHUNK == 0

    kernel = functools.partial(
        _lynxnet_kernel, tq=tq, tw=tw, halo=halo, pada=pada, t_true=t_true,
        c_true=c_true, ksize=ksize, num_layers=L,
        front_cond_inject=front_cond_inject, apply_gelu=apply_gelu,
        activation=activation)

    in_specs = [
        pl.BlockSpec(memory_space=pl.ANY),                  # x_ext   (HBM, manual DMA)
        pl.BlockSpec(memory_space=pl.ANY),                  # cond_ext(HBM, manual DMA)
        pl.BlockSpec((None, 1, C_pad), lambda b, t, l: (l * B + b, 0, 0)),
        pl.BlockSpec((M_pad, C_pad), lambda b, t, l: (0, 0)),      # in_w
        pl.BlockSpec((1, C_pad), lambda b, t, l: (0, 0)),          # in_b
        pl.BlockSpec((None, H_pad, C_pad), lambda b, t, l: (l, 0, 0)),   # wc
        pl.BlockSpec((None, C_pad, I_pad), lambda b, t, l: (l, 0, 0)),   # w1a
        pl.BlockSpec((None, C_pad, I_pad), lambda b, t, l: (l, 0, 0)),   # w1b
        pl.BlockSpec((None, I_pad, C_pad), lambda b, t, l: (l, 0, 0)),   # w2
        pl.BlockSpec((None, ksize, I_pad), lambda b, t, l: (l, 0, 0)),   # wdw
        pl.BlockSpec((None, 4, C_pad), lambda b, t, l: (l, 0, 0)),       # cvec
        pl.BlockSpec((None, 4, I_pad), lambda b, t, l: (l, 0, 0)),       # ivec
        pl.BlockSpec((1, C_pad), lambda b, t, l: (0, 0)),          # norm_g
        pl.BlockSpec((1, C_pad), lambda b, t, l: (0, 0)),          # norm_b
        pl.BlockSpec((C_pad, M_pad), lambda b, t, l: (0, 0)),      # out_w
        pl.BlockSpec((1, M_pad), lambda b, t, l: (0, 0)),          # out_b
    ]

    return pl.pallas_call(
        kernel,
        out_shape=jax.ShapeDtypeStruct((B, T_pad, M_pad), jnp.float32),
        grid_spec=pltpu.PrefetchScalarGridSpec(
            num_scalar_prefetch=0,
            grid=(B, n_t, L),
            in_specs=in_specs,
            out_specs=pl.BlockSpec((None, tq, M_pad), lambda b, t, l: (b, t, 0)),
            scratch_shapes=[
                pltpu.VMEM((tw, M_pad), jnp.float32),               # raw input window
                pltpu.VMEM((tw, H_pad), jnp.float32),               # resident cond
                pltpu.VMEM((tw, C_pad), jnp.float32),               # resident activation
                pltpu.VMEM((tw + 2 * pada, I_pad), jnp.float32),    # dw-conv padded buf
                pltpu.VMEM((tw, I_pad), jnp.float32),               # dw-conv output
                pltpu.SemaphoreType.DMA((2,)),
            ]),
        compiler_params=pltpu.CompilerParams(
            dimension_semantics=("parallel", "parallel", "arbitrary"),
            vmem_limit_bytes=_VMEM_LIMIT),
    )(x_ext, cond_ext, dproj, in_w, in_b, wc, w1a, w1b, w2, wdw,
      cvec, ivec, norm_g, norm_b, out_w, out_b)


# ---------------------------------------------------------------------------
# Model glue (plain JAX)
# ---------------------------------------------------------------------------
def sinusoidal_pos_emb(t, dim):
    half = dim // 2
    emb = math.log(10000.0) / (half - 1)
    freqs = jnp.exp(jnp.arange(half, dtype=jnp.float32) * -emb)
    e = t[:, None] * freqs[None, :]
    return jnp.concatenate([jnp.sin(e), jnp.cos(e)], axis=-1)


def lynxnet_forward(spec, diffusion_step, cond, params, *, n_feats, in_dims,
                    kernel_size=31, activation='PReLU', strong_cond=False,
                    time_tile=1024, mxu_dtype=jnp.bfloat16):
    """
    spec:           [B, F, M, T]
    diffusion_step: [B, 1]
    cond:           [B, H, T]
    returns         [B, F, M, T]
    """
    assert kernel_size % 2 == 1, "depthwise 'same' conv assumes odd kernel size"
    if activation not in ('PReLU', 'SiLU', 'ReLU'):
        raise ValueError(f'{activation} is not a valid activation')
    B = spec.shape[0]
    T = spec.shape[-1]
    M = in_dims * n_feats
    C = params['in_w'].shape[1]
    H = cond.shape[1]
    L = len(params['layers'])
    inner = params['layers'][0]['w1a'].shape[1]
    pad = kernel_size // 2

    # lane-dense padded sizes + time tiling (tq/halo multiples of _RCHUNK)
    C_pad = _round_up(C, _LANE)
    H_pad = _round_up(H, _LANE)
    M_pad = _round_up(M, _LANE)
    I_pad = _round_up(inner, _LANE)
    tq = min(_round_up(time_tile, _RCHUNK), _round_up(T, _RCHUNK))
    n_t = -(-T // tq)
    T_pad = n_t * tq
    halo = _round_up(pad * L, _RCHUNK)      # overlapped-tiling halo

    def cast_w(x):
        return x if mxu_dtype is None else x.astype(mxu_dtype)

    # spec -> channels-last [B, T, M], halo-extended + zero padded (single pad)
    if n_feats == 1:
        x = spec[:, 0]
    else:
        x = spec.reshape(B, M, T)
    x = jnp.transpose(x, (0, 2, 1))
    x = jnp.pad(x, ((0, 0), (halo, halo + T_pad - T), (0, M_pad - M)))
    cond_t = jnp.transpose(cond, (0, 2, 1))
    cond_t = jnp.pad(cond_t, ((0, 0), (halo, halo + T_pad - T), (0, H_pad - H)))

    # diffusion embedding: SinusoidalPosEmb -> Linear -> GELU -> Linear (O(B))
    t_sc = diffusion_step.reshape(B).astype(jnp.float32)
    d = sinusoidal_pos_emb(t_sc, C)
    d = _gelu_exact(jnp.dot(d, params['mlp_w1']) + params['mlp_b1'])
    demb = jnp.dot(d, params['mlp_w2']) + params['mlp_b2']        # [B, C]

    # per-layer diffusion projections hoisted out of the kernel: [L*B, 1, C_pad]
    wd_s = jnp.stack([lp['wd'] for lp in params['layers']])       # [L, C, C]
    bd_s = jnp.stack([lp['bd'] for lp in params['layers']])       # [L, 1, C]
    dproj = jnp.einsum('bc,lcd->lbd', demb, wd_s) + bd_s          # [L, B, C]
    dproj = _pad_to(dproj, (L, B, C_pad)).reshape(L * B, 1, C_pad)

    layers = params['layers']

    def stack_pad(name, tgt):
        return _pad_to(jnp.stack([lp[name] for lp in layers]), (L,) + tgt)

    # big matmul weights: bf16 in HBM (halves weight re-streaming traffic)
    wc = cast_w(stack_pad('wc', (H_pad, C_pad)))
    w1a = cast_w(stack_pad('w1a', (C_pad, I_pad)))
    w1b = cast_w(stack_pad('w1b', (C_pad, I_pad)))
    w2 = cast_w(stack_pad('w2', (I_pad, C_pad)))
    wdw = stack_pad('wdw', (kernel_size, I_pad))                  # f32 (VALU)
    # tiny per-layer vectors packed into two stacked tensors
    cvec = jnp.concatenate(
        [stack_pad(n, (1, C_pad)) for n in ('bc', 'ln_g', 'ln_b', 'b2')], axis=1)
    ivec = jnp.concatenate(
        [stack_pad(n, (1, I_pad)) for n in ('b1a', 'b1b', 'bdw', 'alpha')], axis=1)

    in_w = cast_w(_pad_to(params['in_w'], (M_pad, C_pad)))
    in_b = _pad_to(params['in_b'], (1, C_pad))
    norm_g = _pad_to(params['norm_g'], (1, C_pad))
    norm_b = _pad_to(params['norm_b'], (1, C_pad))
    out_w = cast_w(_pad_to(params['out_w'], (C_pad, M_pad)))
    out_b = _pad_to(params['out_b'], (1, M_pad))

    out = _lynxnet_pallas(
        x, cond_t, dproj, in_w, in_b, wc, w1a, w1b, w2, wdw, cvec, ivec,
        norm_g, norm_b, out_w, out_b,
        tq=tq, halo=halo, t_true=T, c_true=C, ksize=kernel_size,
        front_cond_inject=strong_cond, apply_gelu=not strong_cond,
        activation=activation)                                    # [B, T_pad, M_pad]

    out = jnp.transpose(out[:, :T, :M], (0, 2, 1))                # [B, M, T]
    if n_feats == 1:
        return out[:, None, :, :]
    return out.reshape(B, n_feats, in_dims, T)


def init_params(key, *, in_dims, n_feats, hidden_size, num_channels, num_layers,
                expansion_factor, kernel_size):
    C = num_channels
    inner = C * expansion_factor
    M = in_dims * n_feats
    keys = iter(jax.random.split(key, 16 + 16 * num_layers))

    def w(shape, scale=0.1):
        return (scale * jax.random.normal(next(keys), shape)).astype(jnp.float32)

    params = {
        'in_w': w((M, C)), 'in_b': w((1, C)),
        'mlp_w1': w((C, 4 * C)), 'mlp_b1': w((1, 4 * C)),
        'mlp_w2': w((4 * C, C)), 'mlp_b2': w((1, C)),
        'norm_g': jnp.ones((1, C), jnp.float32),
        'norm_b': jnp.zeros((1, C), jnp.float32),
        'out_w': jnp.zeros((C, M), jnp.float32),   # nn.init.zeros_(output_projection.weight)
        'out_b': w((1, M)),
        'layers': [],
    }
    for _ in range(num_layers):
        params['layers'].append({
            'wc': w((hidden_size, C)), 'bc': w((1, C)),       # conditioner_projection
            'wd': w((C, C)), 'bd': w((1, C)),                 # diffusion_projection
            'ln_g': jnp.ones((1, C), jnp.float32),            # LayerNorm(dim)
            'ln_b': jnp.zeros((1, C), jnp.float32),
            'w1a': w((C, inner)), 'b1a': w((1, inner)),       # Conv1d(dim, 2*inner, 1)  (out half)
            'w1b': w((C, inner)), 'b1b': w((1, inner)),       #                          (gate half)
            'wdw': w((kernel_size, inner)), 'bdw': w((1, inner)),  # depthwise conv
            'alpha': jnp.full((1, inner), 0.25, jnp.float32),      # PReLU(inner)
            'w2': w((inner, C)), 'b2': w((1, C)),             # Conv1d(inner, dim, 1)
        })
    return params


if __name__ == "__main__":
    B, T = 2, 16
    in_dims, n_feats = 8, 1
    hidden_size = 16          # hparams['hidden_size']
    num_channels = 32
    num_layers = 2
    expansion_factor = 2
    kernel_size = 31

    key = jax.random.PRNGKey(0)
    kp, ks, kd, kc = jax.random.split(key, 4)
    params = init_params(kp, in_dims=in_dims, n_feats=n_feats,
                         hidden_size=hidden_size, num_channels=num_channels,
                         num_layers=num_layers, expansion_factor=expansion_factor,
                         kernel_size=kernel_size)

    spec = jax.random.normal(ks, (B, n_feats, in_dims, T), jnp.float32)
    diffusion_step = jax.random.uniform(kd, (B, 1), jnp.float32, 0.0, 100.0)
    cond = jax.random.normal(kc, (B, hidden_size, T), jnp.float32)

    fwd = jax.jit(functools.partial(
        lynxnet_forward, n_feats=n_feats, in_dims=in_dims,
        kernel_size=kernel_size, activation='PReLU', strong_cond=False))

    out = fwd(spec, diffusion_step, cond, params)
    out = jax.block_until_ready(out)
    assert out.shape == (B, n_feats, in_dims, T), out.shape
    assert bool(jnp.all(jnp.isfinite(out)))
    print("KERNEL_OK")
</pallas_src>

<mosaic_0001>
module attributes {stable_mosaic.version = 11 : i64} {
  func.func @_lynxnet_kernel(%arg0: i32, %arg1: i32, %arg2: i32, %arg3: memref<2x80x128xf32, #tpu.memory_space<any>>, %arg4: memref<2x80x128xf32, #tpu.memory_space<any>>, %arg5: memref<1x1x128xf32, #tpu.memory_space<vmem>>, %arg6: memref<128x128xbf16, #tpu.memory_space<vmem>>, %arg7: memref<1x128xf32, #tpu.memory_space<vmem>>, %arg8: memref<1x128x128xbf16, #tpu.memory_space<vmem>>, %arg9: memref<1x128x128xbf16, #tpu.memory_space<vmem>>, %arg10: memref<1x128x128xbf16, #tpu.memory_space<vmem>>, %arg11: memref<1x128x128xbf16, #tpu.memory_space<vmem>>, %arg12: memref<1x31x128xf32, #tpu.memory_space<vmem>>, %arg13: memref<1x4x128xf32, #tpu.memory_space<vmem>>, %arg14: memref<1x4x128xf32, #tpu.memory_space<vmem>>, %arg15: memref<1x128xf32, #tpu.memory_space<vmem>>, %arg16: memref<1x128xf32, #tpu.memory_space<vmem>>, %arg17: memref<128x128xbf16, #tpu.memory_space<vmem>>, %arg18: memref<1x128xf32, #tpu.memory_space<vmem>>, %arg19: memref<1x16x128xf32, #tpu.memory_space<vmem>>, %arg20: memref<80x128xf32, #tpu.memory_space<vmem>>, %arg21: memref<80x128xf32, #tpu.memory_space<vmem>>, %arg22: memref<80x128xf32, #tpu.memory_space<vmem>>, %arg23: memref<112x128xf32, #tpu.memory_space<vmem>>, %arg24: memref<80x128xf32, #tpu.memory_space<vmem>>, %arg25: memref<2x!tpu.dma_semaphore, #tpu.memory_space<semaphore_mem>>) attributes {dimension_semantics = [#tpu.dimension_semantics<parallel>, #tpu.dimension_semantics<parallel>, #tpu.dimension_semantics<arbitrary>], iteration_bounds = array<i64: 2, 1, 2>, scalar_prefetch = 0 : i64, scratch_operands = 6 : i64, tpu.core_type = #tpu.core_type<tc>, window_params = [{}, {}, {transform_indices = @transform_2, window_bounds = array<i64: 1, 1, 128>}, {pipeline_mode = #tpu.pipeline_mode<synchronous>, transform_indices = @transform_3, window_bounds = array<i64: 128, 128>}, {pipeline_mode = #tpu.pipeline_mode<synchronous>, transform_indices = @transform_4, window_bounds = array<i64: 1, 128>}, {transform_indices = @transform_5, window_bounds = array<i64: 1, 128, 128>}, {transform_indices = @transform_6, window_bounds = array<i64: 1, 128, 128>}, {transform_indices = @transform_7, window_bounds = array<i64: 1, 128, 128>}, {transform_indices = @transform_8, window_bounds = array<i64: 1, 128, 128>}, {transform_indices = @transform_9, window_bounds = array<i64: 1, 31, 128>}, {transform_indices = @transform_10, window_bounds = array<i64: 1, 4, 128>}, {transform_indices = @transform_11, window_bounds = array<i64: 1, 4, 128>}, {pipeline_mode = #tpu.pipeline_mode<synchronous>, transform_indices = @transform_12, window_bounds = array<i64: 1, 128>}, {pipeline_mode = #tpu.pipeline_mode<synchronous>, transform_indices = @transform_13, window_bounds = array<i64: 1, 128>}, {pipeline_mode = #tpu.pipeline_mode<synchronous>, transform_indices = @transform_14, window_bounds = array<i64: 128, 128>}, {pipeline_mode = #tpu.pipeline_mode<synchronous>, transform_indices = @transform_15, window_bounds = array<i64: 1, 128>}, {transform_indices = @transform_16, window_bounds = array<i64: 1, 16, 128>}]} {
    %c0_i32 = arith.constant 0 : i32
    %0 = arith.cmpi eq, %arg2, %c0_i32 : i32
    %1 = arith.extui %0 : i1 to i32
    %c0_i32_0 = arith.constant 0 : i32
    %2 = arith.cmpi ne, %1, %c0_i32_0 : i32
    scf.if %2 {
      %c16_i32_65 = arith.constant 16 : i32
      %105 = arith.muli %arg1, %c16_i32_65 : i32
      %106 = tpu.assume_multiple %105, 8 : i32
      %c0_i32_66 = arith.constant 0 : i32
      %c0_i32_67 = arith.constant 0 : i32
      %107 = tpu.memref_slice %arg3[%arg0, %106, %c0_i32_67] : memref<2x80x128xf32, #tpu.memory_space<any>> -> memref<1x80x128xf32, #tpu.memory_space<any>>
      %108 = tpu.memref_squeeze %107 : memref<1x80x128xf32, #tpu.memory_space<any>> -> memref<80x128xf32, #tpu.memory_space<any>>
      %109 = tpu.memref_slice %arg25[%c0_i32_66] : memref<2x!tpu.dma_semaphore, #tpu.memory_space<semaphore_mem>> -> memref<1x!tpu.dma_semaphore, #tpu.memory_space<semaphore_mem>>
      %110 = tpu.memref_squeeze %109 : memref<1x!tpu.dma_semaphore, #tpu.memory_space<semaphore_mem>> -> memref<!tpu.dma_semaphore, #tpu.memory_space<semaphore_mem>>
      tpu.enqueue_dma source(%108 : memref<80x128xf32, #tpu.memory_space<any>>) target(%arg20 : memref<80x128xf32, #tpu.memory_space<vmem>>) target_semaphore(%110 : memref<!tpu.dma_semaphore, #tpu.memory_space<semaphore_mem>>)
      %c1_i32_68 = arith.constant 1 : i32
      %c0_i32_69 = arith.constant 0 : i32
      %111 = tpu.memref_slice %arg4[%arg0, %106, %c0_i32_69] : memref<2x80x128xf32, #tpu.memory_space<any>> -> memref<1x80x128xf32, #tpu.memory_space<any>>
      %112 = tpu.memref_squeeze %111 : memref<1x80x128xf32, #tpu.memory_space<any>> -> memref<80x128xf32, #tpu.memory_space<any>>
      %113 = tpu.memref_slice %arg25[%c1_i32_68] : memref<2x!tpu.dma_semaphore, #tpu.memory_space<semaphore_mem>> -> memref<1x!tpu.dma_semaphore, #tpu.memory_space<semaphore_mem>>
      %114 = tpu.memref_squeeze %113 : memref<1x!tpu.dma_semaphore, #tpu.memory_space<semaphore_mem>> -> memref<!tpu.dma_semaphore, #tpu.memory_space<semaphore_mem>>
      tpu.enqueue_dma source(%112 : memref<80x128xf32, #tpu.memory_space<any>>) target(%arg21 : memref<80x128xf32, #tpu.memory_space<vmem>>) target_semaphore(%114 : memref<!tpu.dma_semaphore, #tpu.memory_space<semaphore_mem>>)
      %c0_i32_70 = arith.constant 0 : i32
      %c0_i32_71 = arith.constant 0 : i32
      %115 = tpu.memref_slice %arg3[%arg0, %106, %c0_i32_71] : memref<2x80x128xf32, #tpu.memory_space<any>> -> memref<1x80x128xf32, #tpu.memory_space<any>>
      %116 = tpu.memref_squeeze %115 : memref<1x80x128xf32, #tpu.memory_space<any>> -> memref<80x128xf32, #tpu.memory_space<any>>
      %117 = tpu.memref_slice %arg25[%c0_i32_70] : memref<2x!tpu.dma_semaphore, #tpu.memory_space<semaphore_mem>> -> memref<1x!tpu.dma_semaphore, #tpu.memory_space<semaphore_mem>>
      %118 = tpu.memref_squeeze %117 : memref<1x!tpu.dma_semaphore, #tpu.memory_space<semaphore_mem>> -> memref<!tpu.dma_semaphore, #tpu.memory_space<semaphore_mem>>
      tpu.wait_dma2 semaphore(%118 : memref<!tpu.dma_semaphore, #tpu.memory_space<semaphore_mem>>) src(%116 : memref<80x128xf32, #tpu.memory_space<any>>) dst(%arg20 : memref<80x128xf32, #tpu.memory_space<vmem>>)
      %c1_i32_72 = arith.constant 1 : i32
      %c0_i32_73 = arith.constant 0 : i32
      %119 = tpu.memref_slice %arg4[%arg0, %106, %c0_i32_73] : memref<2x80x128xf32, #tpu.memory_space<any>> -> memref<1x80x128xf32, #tpu.memory_space<any>>
      %120 = tpu.memref_squeeze %119 : memref<1x80x128xf32, #tpu.memory_space<any>> -> memref<80x128xf32, #tpu.memory_space<any>>
      %121 = tpu.memref_slice %arg25[%c1_i32_72] : memref<2x!tpu.dma_semaphore, #tpu.memory_space<semaphore_mem>> -> memref<1x!tpu.dma_semaphore, #tpu.memory_space<semaphore_mem>>
      %122 = tpu.memref_squeeze %121 : memref<1x!tpu.dma_semaphore, #tpu.memory_space<semaphore_mem>> -> memref<!tpu.dma_semaphore, #tpu.memory_space<semaphore_mem>>
      tpu.wait_dma2 semaphore(%122 : memref<!tpu.dma_semaphore, #tpu.memory_space<semaphore_mem>>) src(%120 : memref<80x128xf32, #tpu.memory_space<any>>) dst(%arg21 : memref<80x128xf32, #tpu.memory_space<vmem>>)
      %c0_74 = arith.constant 0 : index
      %c0_75 = arith.constant 0 : index
      %123 = vector.load %arg20[%c0_74, %c0_75] : memref<80x128xf32, #tpu.memory_space<vmem>>, vector<80x128xf32>
      %c0_76 = arith.constant 0 : index
      %c0_77 = arith.constant 0 : index
      %124 = vector.load %arg6[%c0_76, %c0_77] : memref<128x128xbf16, #tpu.memory_space<vmem>>, vector<128x128xbf16>
      %125 = arith.truncf %123 : vector<80x128xf32> to vector<80x128xbf16>
      %cst_78 = arith.constant dense<0.000000e+00> : vector<80x128xf32>
      %126 = tpu.matmul %125, %124, %cst_78 {dimension_numbers = #tpu.dot_dimension_numbers<[1], [0], [0], [1], [0, 0, 1, 1], [], []>} : vector<80x128xbf16>, vector<128x128xbf16>, vector<80x128xf32> -> vector<80x128xf32>
      %c0_79 = arith.constant 0 : index
      %c0_80 = arith.constant 0 : index
      %127 = vector.load %arg7[%c0_79, %c0_80] : memref<1x128xf32, #tpu.memory_space<vmem>>, vector<1x128xf32>
      %128 = vector.broadcast %127 : vector<1x128xf32> to vector<80x128xf32>
      %129 = arith.addf %126, %128 : vector<80x128xf32>
      %cst_81 = arith.constant 5.000000e-01 : f32
      %130 = vector.broadcast %cst_81 : f32 to vector<80x128xf32>
      %131 = arith.mulf %129, %130 : vector<80x128xf32>
      %cst_82 = arith.constant 0.707106769 : f32
      %132 = vector.broadcast %cst_82 : f32 to vector<80x128xf32>
      %133 = arith.mulf %129, %132 : vector<80x128xf32>
      %134 = math.erf %133 : vector<80x128xf32>
      %cst_83 = arith.constant 1.000000e+00 : f32
      %135 = vector.broadcast %cst_83 : f32 to vector<80x128xf32>
      %136 = arith.addf %135, %134 : vector<80x128xf32>
      %137 = arith.mulf %131, %136 : vector<80x128xf32>
      %c0_84 = arith.constant 0 : index
      %c0_85 = arith.constant 0 : index
      %138 = vector.load %arg22[%c0_84, %c0_85] : memref<80x128xf32, #tpu.memory_space<vmem>>, vector<80x128xf32>
      tpu.vector_store %arg22[%c0_84, %c0_85], %137 {strides = array<i32>} : memref<80x128xf32, #tpu.memory_space<vmem>>, vector<80x128xf32>,
      %cst_86 = arith.constant 0.000000e+00 : f32
      %139 = vector.broadcast %cst_86 : f32 to vector<16x128xf32>
      %c0_87 = arith.constant 0 : index
      %c0_88 = arith.constant 0 : index
      %140 = vector.load %arg23[%c0_87, %c0_88] : memref<112x128xf32, #tpu.memory_space<vmem>>, vector<16x128xf32>
      tpu.vector_store %arg23[%c0_87, %c0_88], %139 {strides = array<i32>} : memref<112x128xf32, #tpu.memory_space<vmem>>, vector<16x128xf32>,
      %cst_89 = arith.constant 0.000000e+00 : f32
      %141 = vector.broadcast %cst_89 : f32 to vector<16x128xf32>
      %c96 = arith.constant 96 : index
      %c0_90 = arith.constant 0 : index
      %142 = vector.load %arg23[%c96, %c0_90] : memref<112x128xf32, #tpu.memory_space<vmem>>, vector<16x128xf32>
      tpu.vector_store %arg23[%c96, %c0_90], %141 {strides = array<i32>} : memref<112x128xf32, #tpu.memory_space<vmem>>, vector<16x128xf32>,
    } else {
    }
    %c0 = arith.constant 0 : index
    %c0_1 = arith.constant 0 : index
    %3 = vector.load %arg22[%c0, %c0_1] : memref<80x128xf32, #tpu.memory_space<vmem>>, vector<80x128xf32>
    %c0_2 = arith.constant 0 : index
    %c0_3 = arith.constant 0 : index
    %4 = vector.load %arg21[%c0_2, %c0_3] : memref<80x128xf32, #tpu.memory_space<vmem>>, vector<80x128xf32>
    %c0_4 = arith.constant 0 : index
    %c0_5 = arith.constant 0 : index
    %c0_6 = arith.constant 0 : index
    %5 = vector.load %arg8[%c0_4, %c0_5, %c0_6] : memref<1x128x128xbf16, #tpu.memory_space<vmem>>, vector<1x128x128xbf16>
    %6 = vector.shape_cast %5 : vector<1x128x128xbf16> to vector<128x128xbf16>
    %7 = arith.truncf %4 : vector<80x128xf32> to vector<80x128xbf16>
    %cst = arith.constant dense<0.000000e+00> : vector<80x128xf32>
    %8 = tpu.matmul %7, %6, %cst {dimension_numbers = #tpu.dot_dimension_numbers<[1], [0], [0], [1], [0, 0, 1, 1], [], []>} : vector<80x128xbf16>, vector<128x128xbf16>, vector<80x128xf32> -> vector<80x128xf32>
    %9 = arith.addf %3, %8 : vector<80x128xf32>
    %c0_7 = arith.constant 0 : index
    %c0_8 = arith.constant 0 : index
    %c0_9 = arith.constant 0 : index
    %10 = vector.load %arg13[%c0_7, %c0_8, %c0_9] : memref<1x4x128xf32, #tpu.memory_space<vmem>>, vector<1x1x128xf32>
    %11 = vector.shape_cast %10 : vector<1x1x128xf32> to vector<1x128xf32>
    %12 = vector.broadcast %11 : vector<1x128xf32> to vector<80x128xf32>
    %13 = arith.addf %9, %12 : vector<80x128xf32>
    %c0_10 = arith.constant 0 : index
    %c0_11 = arith.constant 0 : index
    %c0_12 = arith.constant 0 : index
    %14 = vector.load %arg5[%c0_10, %c0_11, %c0_12] : memref<1x1x128xf32, #tpu.memory_space<vmem>>, vector<1x1x128xf32>
    %15 = vector.shape_cast %14 : vector<1x1x128xf32> to vector<1x128xf32>
    %16 = vector.broadcast %15 : vector<1x128xf32> to vector<80x128xf32>
    %17 = arith.addf %13, %16 : vector<80x128xf32>
    %c0_13 = arith.constant 0 : index
    %c1 = arith.constant 1 : index
    %c0_14 = arith.constant 0 : index
    %18 = vector.load %arg13[%c0_13, %c1, %c0_14] : memref<1x4x128xf32, #tpu.memory_space<vmem>>, vector<1x1x128xf32>
    %19 = vector.shape_cast %18 : vector<1x1x128xf32> to vector<1x128xf32>
    %c0_15 = arith.constant 0 : index
    %c2 = arith.constant 2 : index
    %c0_16 = arith.constant 0 : index
    %20 = vector.load %arg13[%c0_15, %c2, %c0_16] : memref<1x4x128xf32, #tpu.memory_space<vmem>>, vector<1x1x128xf32>
    %21 = vector.shape_cast %20 : vector<1x1x128xf32> to vector<1x128xf32>
    %cst_17 = arith.constant dense<0.000000e+00> : vector<80xf32>
    %22 = vector.multi_reduction <add>, %17, %cst_17 [1] : vector<80x128xf32> to vector<80xf32>
    %23 = vector.shape_cast %22 : vector<80xf32> to vector<80x1xf32>
    %cst_18 = arith.constant 3.125000e-02 : f32
    %24 = vector.broadcast %cst_18 : f32 to vector<80x1xf32>
    %25 = arith.mulf %23, %24 : vector<80x1xf32>
    %26 = arith.mulf %17, %17 : vector<80x128xf32>
    %cst_19 = arith.constant dense<0.000000e+00> : vector<80xf32>
    %27 = vector.multi_reduction <add>, %26, %cst_19 [1] : vector<80x128xf32> to vector<80xf32>
    %28 = vector.shape_cast %27 : vector<80xf32> to vector<80x1xf32>
    %cst_20 = arith.constant 3.125000e-02 : f32
    %29 = vector.broadcast %cst_20 : f32 to vector<80x1xf32>
    %30 = arith.mulf %28, %29 : vector<80x1xf32>
    %31 = arith.mulf %25, %25 : vector<80x1xf32>
    %32 = arith.subf %30, %31 : vector<80x1xf32>
    %cst_21 = arith.constant 0.000000e+00 : f32
    %33 = vector.broadcast %cst_21 : f32 to vector<80x1xf32>
    %34 = arith.maximumf %32, %33 : vector<80x1xf32>
    %35 = vector.broadcast %25 : vector<80x1xf32> to vector<80x128xf32>
    %36 = arith.subf %17, %35 : vector<80x128xf32>
    %cst_22 = arith.constant 9.99999974E-6 : f32
    %37 = vector.broadcast %cst_22 : f32 to vector<80x1xf32>
    %38 = arith.addf %34, %37 : vector<80x1xf32>
    %39 = math.rsqrt %38 : vector<80x1xf32>
    %40 = vector.broadcast %39 : vector<80x1xf32> to vector<80x128xf32>
    %41 = arith.mulf %36, %40 : vector<80x128xf32>
    %42 = vector.broadcast %19 : vector<1x128xf32> to vector<80x128xf32>
    %43 = arith.mulf %41, %42 : vector<80x128xf32>
    %44 = vector.broadcast %21 : vector<1x128xf32> to vector<80x128xf32>
    %45 = arith.addf %43, %44 : vector<80x128xf32>
    %c0_23 = arith.constant 0 : index
    %c0_24 = arith.constant 0 : index
    %c0_25 = arith.constant 0 : index
    %46 = vector.load %arg9[%c0_23, %c0_24, %c0_25] : memref<1x128x128xbf16, #tpu.memory_space<vmem>>, vector<1x128x128xbf16>
    %47 = vector.shape_cast %46 : vector<1x128x128xbf16> to vector<128x128xbf16>
    %48 = arith.truncf %45 : vector<80x128xf32> to vector<80x128xbf16>
    %cst_26 = arith.constant dense<0.000000e+00> : vector<80x128xf32>
    %49 = tpu.matmul %48, %47, %cst_26 {dimension_numbers = #tpu.dot_dimension_numbers<[1], [0], [0], [1], [0, 0, 1, 1], [], []>} : vector<80x128xbf16>, vector<128x128xbf16>, vector<80x128xf32> -> vector<80x128xf32>
    %c0_27 = arith.constant 0 : index
    %c0_28 = arith.constant 0 : index
    %c0_29 = arith.constant 0 : index
    %50 = vector.load %arg14[%c0_27, %c0_28, %c0_29] : memref<1x4x128xf32, #tpu.memory_space<vmem>>, vector<1x1x128xf32>
    %51 = vector.shape_cast %50 : vector<1x1x128xf32> to vector<1x128xf32>
    %52 = vector.broadcast %51 : vector<1x128xf32> to vector<80x128xf32>
    %53 = arith.addf %49, %52 : vector<80x128xf32>
    %c0_30 = arith.constant 0 : index
    %c0_31 = arith.constant 0 : index
    %c0_32 = arith.constant 0 : index
    %54 = vector.load %arg10[%c0_30, %c0_31, %c0_32] : memref<1x128x128xbf16, #tpu.memory_space<vmem>>, vector<1x128x128xbf16>
    %55 = vector.shape_cast %54 : vector<1x128x128xbf16> to vector<128x128xbf16>
    %56 = arith.truncf %45 : vector<80x128xf32> to vector<80x128xbf16>
    %cst_33 = arith.constant dense<0.000000e+00> : vector<80x128xf32>
    %57 = tpu.matmul %56, %55, %cst_33 {dimension_numbers = #tpu.dot_dimension_numbers<[1], [0], [0], [1], [0, 0, 1, 1], [], []>} : vector<80x128xbf16>, vector<128x128xbf16>, vector<80x128xf32> -> vector<80x128xf32>
    %c0_34 = arith.constant 0 : index
    %c1_35 = arith.constant 1 : index
    %c0_36 = arith.constant 0 : index
    %58 = vector.load %arg14[%c0_34, %c1_35, %c0_36] : memref<1x4x128xf32, #tpu.memory_space<vmem>>, vector<1x1x128xf32>
    %59 = vector.shape_cast %58 : vector<1x1x128xf32> to vector<1x128xf32>
    %60 = vector.broadcast %59 : vector<1x128xf32> to vector<80x128xf32>
    %61 = arith.addf %57, %60 : vector<80x128xf32>
    %62 = arith.negf %61 : vector<80x128xf32>
    %63 = math.exp %62 : vector<80x128xf32>
    %cst_37 = arith.constant 1.000000e+00 : f32
    %64 = vector.broadcast %cst_37 : f32 to vector<80x128xf32>
    %65 = arith.addf %64, %63 : vector<80x128xf32>
    %66 = arith.divf %64, %65 : vector<80x128xf32>
    %67 = arith.mulf %61, %66 : vector<80x128xf32>
    %68 = arith.mulf %53, %67 : vector<80x128xf32>
    %69 = tpu.iota {dimensions = array<i32: 0>} : vector<80x1xi32>
    %c16_i32 = arith.constant 16 : i32
    %70 = arith.muli %arg1, %c16_i32 : i32
    %c32_i32 = arith.constant 32 : i32
    %71 = arith.subi %70, %c32_i32 : i32
    %72 = vector.broadcast %71 : i32 to vector<80x1xi32>
    %73 = arith.addi %69, %72 : vector<80x1xi32>
    %c0_i32_38 = arith.constant 0 : i32
    %74 = vector.broadcast %c0_i32_38 : i32 to vector<80x1xi32>
    %75 = arith.cmpi sge, %73, %74 : vector<80x1xi32>
    %c16_i32_39 = arith.constant 16 : i32
    %76 = vector.broadcast %c16_i32_39 : i32 to vector<80x1xi32>
    %77 = arith.cmpi slt, %73, %76 : vector<80x1xi32>
    %78 = arith.andi %75, %77 : vector<80x1xi1>
    %cst_40 = arith.constant 0.000000e+00 : f32
    %79 = vector.shape_cast %78 : vector<80x1xi1> to vector<80x1xi1>
    %80 = vector.broadcast %79 : vector<80x1xi1> to vector<80x128xi1>
    %81 = vector.broadcast %cst_40 : f32 to vector<80x128xf32>
    %82 = arith.select %80, %68, %81 : vector<80x128xi1>, vector<80x128xf32>
    %c16 = arith.constant 16 : index
    %c0_41 = arith.constant 0 : index
    %83 = vector.load %arg23[%c16, %c0_41] : memref<112x128xf32, #tpu.memory_space<vmem>>, vector<80x128xf32>
    tpu.vector_store %arg23[%c16, %c0_41], %82 {strides = array<i32>} : memref<112x128xf32, #tpu.memory_space<vmem>>, vector<80x128xf32>,
    %c0_42 = arith.constant 0 : index
    %c0_43 = arith.constant 0 : index
    %c0_44 = arith.constant 0 : index
    %84 = vector.load %arg12[%c0_42, %c0_43, %c0_44] : memref<1x31x128xf32, #tpu.memory_space<vmem>>, vector<1x31x128xf32>
    %85 = vector.shape_cast %84 : vector<1x31x128xf32> to vector<31x128xf32>
    %c0_45 = arith.constant 0 : index
    %c2_46 = arith.constant 2 : index
    %c0_47 = arith.constant 0 : index
    %86 = vector.load %arg14[%c0_45, %c2_46, %c0_47] : memref<1x4x128xf32, #tpu.memory_space<vmem>>, vector<1x1x128xf32>
    %87 = vector.shape_cast %86 : vector<1x1x128xf32> to vector<1x128xf32>
    %c0_48 = arith.constant 0 : index
    %c3 = arith.constant 3 : index
    %c0_49 = arith.constant 0 : index
    %88 = vector.load %arg14[%c0_48, %c3, %c0_49] : memref<1x4x128xf32, #tpu.memory_space<vmem>>, vector<1x1x128xf32>
    %89 = vector.shape_cast %88 : vector<1x1x128xf32> to vector<1x128xf32>
    %c0_i32_50 = arith.constant 0 : i32
    %c5_i32 = arith.constant 5 : i32
    %90 = arith.addi %c0_i32_50, %c5_i32 : i32
    %c1_i32 = arith.constant 1 : i32
    scf.for %arg26 = %c0_i32_50 to %90 step %c1_i32  : i32 {
      %c1_i32_65 = arith.constant 1 : i32
      %105 = arith.muli %arg26, %c1_i32_65 : i32
      %c0_i32_66 = arith.constant 0 : i32
      %106 = arith.addi %c0_i32_66, %105 : i32
      %c16_i32_67 = arith.constant 16 : i32
      %107 = arith.muli %106, %c16_i32_67 : i32
      %108 = tpu.assume_multiple %107, 16 : i32
      %c1_i32_68 = arith.constant 1 : i32
      %109 = arith.addi %108, %c1_i32_68 : i32
      %110 = arith.index_cast %109 : i32 to index
      %c0_69 = arith.constant 0 : index
      %111 = vector.load %arg23[%110, %c0_69] : memref<112x128xf32, #tpu.memory_space<vmem>>, vector<16x128xf32>
      %112 = vector.extract_strided_slice %85 {offsets = [0, 0], sizes = [1, 128], strides = [1, 1]} : vector<31x128xf32> to vector<1x128xf32>
      %113 = vector.broadcast %112 : vector<1x128xf32> to vector<16x128xf32>
      %114 = arith.mulf %111, %113 : vector<16x128xf32>
      %c1_i32_70 = arith.constant 1 : i32
      %115 = arith.addi %108, %c1_i32_70 : i32
      %c1_i32_71 = arith.constant 1 : i32
      %116 = arith.addi %115, %c1_i32_71 : i32
      %117 = arith.index_cast %116 : i32 to index
      %c0_72 = arith.constant 0 : index
      %118 = vector.load %arg23[%117, %c0_72] : memref<112x128xf32, #tpu.memory_space<vmem>>, vector<16x128xf32>
      %119 = vector.extract_strided_slice %85 {offsets = [1, 0], sizes = [1, 128], strides = [1, 1]} : vector<31x128xf32> to vector<1x128xf32>
      %120 = vector.broadcast %119 : vector<1x128xf32> to vector<16x128xf32>
      %121 = arith.mulf %118, %120 : vector<16x128xf32>
      %122 = arith.addf %114, %121 : vector<16x128xf32>
      %c1_i32_73 = arith.constant 1 : i32
      %123 = arith.addi %108, %c1_i32_73 : i32
      %c2_i32 = arith.constant 2 : i32
      %124 = arith.addi %123, %c2_i32 : i32
      %125 = arith.index_cast %124 : i32 to index
      %c0_74 = arith.constant 0 : index
      %126 = vector.load %arg23[%125, %c0_74] : memref<112x128xf32, #tpu.memory_space<vmem>>, vector<16x128xf32>
      %127 = vector.extract_strided_slice %85 {offsets = [2, 0], sizes = [1, 128], strides = [1, 1]} : vector<31x128xf32> to vector<1x128xf32>
      %128 = vector.broadcast %127 : vector<1x128xf32> to vector<16x128xf32>
      %129 = arith.mulf %126, %128 : vector<16x128xf32>
      %130 = arith.addf %122, %129 : vector<16x128xf32>
      %c1_i32_75 = arith.constant 1 : i32
      %131 = arith.addi %108, %c1_i32_75 : i32
      %c3_i32 = arith.constant 3 : i32
      %132 = arith.addi %131, %c3_i32 : i32
      %133 = arith.index_cast %132 : i32 to index
      %c0_76 = arith.constant 0 : index
      %134 = vector.load %arg23[%133, %c0_76] : memref<112x128xf32, #tpu.memory_space<vmem>>, vector<16x128xf32>
      %135 = vector.extract_strided_slice %85 {offsets = [3, 0], sizes = [1, 128], strides = [1, 1]} : vector<31x128xf32> to vector<1x128xf32>
      %136 = vector.broadcast %135 : vector<1x128xf32> to vector<16x128xf32>
      %137 = arith.mulf %134, %136 : vector<16x128xf32>
      %138 = arith.addf %130, %137 : vector<16x128xf32>
      %c1_i32_77 = arith.constant 1 : i32
      %139 = arith.addi %108, %c1_i32_77 : i32
      %c4_i32 = arith.constant 4 : i32
      %140 = arith.addi %139, %c4_i32 : i32
      %141 = arith.index_cast %140 : i32 to index
      %c0_78 = arith.constant 0 : index
      %142 = vector.load %arg23[%141, %c0_78] : memref<112x128xf32, #tpu.memory_space<vmem>>, vector<16x128xf32>
      %143 = vector.extract_strided_slice %85 {offsets = [4, 0], sizes = [1, 128], strides = [1, 1]} : vector<31x128xf32> to vector<1x128xf32>
      %144 = vector.broadcast %143 : vector<1x128xf32> to vector<16x128xf32>
      %145 = arith.mulf %142, %144 : vector<16x128xf32>
      %146 = arith.addf %138, %145 : vector<16x128xf32>
      %c1_i32_79 = arith.constant 1 : i32
      %147 = arith.addi %108, %c1_i32_79 : i32
      %c5_i32_80 = arith.constant 5 : i32
      %148 = arith.addi %147, %c5_i32_80 : i32
      %149 = arith.index_cast %148 : i32 to index
      %c0_81 = arith.constant 0 : index
      %150 = vector.load %arg23[%149, %c0_81] : memref<112x128xf32, #tpu.memory_space<vmem>>, vector<16x128xf32>
      %151 = vector.extract_strided_slice %85 {offsets = [5, 0], sizes = [1, 128], strides = [1, 1]} : vector<31x128xf32> to vector<1x128xf32>
      %152 = vector.broadcast %151 : vector<1x128xf32> to vector<16x128xf32>
      %153 = arith.mulf %150, %152 : vector<16x128xf32>
      %154 = arith.addf %146, %153 : vector<16x128xf32>
      %c1_i32_82 = arith.constant 1 : i32
      %155 = arith.addi %108, %c1_i32_82 : i32
      %c6_i32 = arith.constant 6 : i32
      %156 = arith.addi %155, %c6_i32 : i32
      %157 = arith.index_cast %156 : i32 to index
      %c0_83 = arith.constant 0 : index
      %158 = vector.load %arg23[%157, %c0_83] : memref<112x128xf32, #tpu.memory_space<vmem>>, vector<16x128xf32>
      %159 = vector.extract_strided_slice %85 {offsets = [6, 0], sizes = [1, 128], strides = [1, 1]} : vector<31x128xf32> to vector<1x128xf32>
      %160 = vector.broadcast %159 : vector<1x128xf32> to vector<16x128xf32>
      %161 = arith.mulf %158, %160 : vector<16x128xf32>
      %162 = arith.addf %154, %161 : vector<16x128xf32>
      %c1_i32_84 = arith.constant 1 : i32
      %163 = arith.addi %108, %c1_i32_84 : i32
      %c7_i32 = arith.constant 7 : i32
      %164 = arith.addi %163, %c7_i32 : i32
      %165 = arith.index_cast %164 : i32 to index
      %c0_85 = arith.constant 0 : index
      %166 = vector.load %arg23[%165, %c0_85] : memref<112x128xf32, #tpu.memory_space<vmem>>, vector<16x128xf32>
      %167 = vector.extract_strided_slice %85 {offsets = [7, 0], sizes = [1, 128], strides = [1, 1]} : vector<31x128xf32> to vector<1x128xf32>
      %168 = vector.broadcast %167 : vector<1x128xf32> to vector<16x128xf32>
      %169 = arith.mulf %166, %168 : vector<16x128xf32>
      %170 = arith.addf %162, %169 : vector<16x128xf32>
      %c1_i32_86 = arith.constant 1 : i32
      %171 = arith.addi %108, %c1_i32_86 : i32
      %c8_i32 = arith.constant 8 : i32
      %172 = arith.addi %171, %c8_i32 : i32
      %173 = arith.index_cast %172 : i32 to index
      %c0_87 = arith.constant 0 : index
      %174 = vector.load %arg23[%173, %c0_87] : memref<112x128xf32, #tpu.memory_space<vmem>>, vector<16x128xf32>
      %175 = vector.extract_strided_slice %85 {offsets = [8, 0], sizes = [1, 128], strides = [1, 1]} : vector<31x128xf32> to vector<1x128xf32>
      %176 = vector.broadcast %175 : vector<1x128xf32> to vector<16x128xf32>
      %177 = arith.mulf %174, %176 : vector<16x128xf32>
      %178 = arith.addf %170, %177 : vector<16x128xf32>
      %c1_i32_88 = arith.constant 1 : i32
      %179 = arith.addi %108, %c1_i32_88 : i32
      %c9_i32 = arith.constant 9 : i32
      %180 = arith.addi %179, %c9_i32 : i32
      %181 = arith.index_cast %180 : i32 to index
      %c0_89 = arith.constant 0 : index
      %182 = vector.load %arg23[%181, %c0_89] : memref<112x128xf32, #tpu.memory_space<vmem>>, vector<16x128xf32>
      %183 = vector.extract_strided_slice %85 {offsets = [9, 0], sizes = [1, 128], strides = [1, 1]} : vector<31x128xf32> to vector<1x128xf32>
      %184 = vector.broadcast %183 : vector<1x128xf32> to vector<16x128xf32>
      %185 = arith.mulf %182, %184 : vector<16x128xf32>
      %186 = arith.addf %178, %185 : vector<16x128xf32>
      %c1_i32_90 = arith.constant 1 : i32
      %187 = arith.addi %108, %c1_i32_90 : i32
      %c10_i32 = arith.constant 10 : i32
      %188 = arith.addi %187, %c10_i32 : i32
      %189 = arith.index_cast %188 : i32 to index
      %c0_91 = arith.constant 0 : index
      %190 = vector.load %arg23[%189, %c0_91] : memref<112x128xf32, #tpu.memory_space<vmem>>, vector<16x128xf32>
      %191 = vector.extract_strided_slice %85 {offsets = [10, 0], sizes = [1, 128], strides = [1, 1]} : vector<31x128xf32> to vector<1x128xf32>
      %192 = vector.broadcast %191 : vector<1x128xf32> to vector<16x128xf32>
      %193 = arith.mulf %190, %192 : vector<16x128xf32>
      %194 = arith.addf %186, %193 : vector<16x128xf32>
      %c1_i32_92 = arith.constant 1 : i32
      %195 = arith.addi %108, %c1_i32_92 : i32
      %c11_i32 = arith.constant 11 : i32
      %196 = arith.addi %195, %c11_i32 : i32
      %197 = arith.index_cast %196 : i32 to index
      %c0_93 = arith.constant 0 : index
      %198 = vector.load %arg23[%197, %c0_93] : memref<112x128xf32, #tpu.memory_space<vmem>>, vector<16x128xf32>
      %199 = vector.extract_strided_slice %85 {offsets = [11, 0], sizes = [1, 128], strides = [1, 1]} : vector<31x128xf32> to vector<1x128xf32>
      %200 = vector.broadcast %199 : vector<1x128xf32> to vector<16x128xf32>
      %201 = arith.mulf %198, %200 : vector<16x128xf32>
      %202 = arith.addf %194, %201 : vector<16x128xf32>
      %c1_i32_94 = arith.constant 1 : i32
      %203 = arith.addi %108, %c1_i32_94 : i32
      %c12_i32 = arith.constant 12 : i32
      %204 = arith.addi %203, %c12_i32 : i32
      %205 = arith.index_cast %204 : i32 to index
      %c0_95 = arith.constant 0 : index
      %206 = vector.load %arg23[%205, %c0_95] : memref<112x128xf32, #tpu.memory_space<vmem>>, vector<16x128xf32>
      %207 = vector.extract_strided_slice %85 {offsets = [12, 0], sizes = [1, 128], strides = [1, 1]} : vector<31x128xf32> to vector<1x128xf32>
      %208 = vector.broadcast %207 : vector<1x128xf32> to vector<16x128xf32>
      %209 = arith.mulf %206, %208 : vector<16x128xf32>
      %210 = arith.addf %202, %209 : vector<16x128xf32>
      %c1_i32_96 = arith.constant 1 : i32
      %211 = arith.addi %108, %c1_i32_96 : i32
      %c13_i32 = arith.constant 13 : i32
      %212 = arith.addi %211, %c13_i32 : i32
      %213 = arith.index_cast %212 : i32 to index
      %c0_97 = arith.constant 0 : index
      %214 = vector.load %arg23[%213, %c0_97] : memref<112x128xf32, #tpu.memory_space<vmem>>, vector<16x128xf32>
      %215 = vector.extract_strided_slice %85 {offsets = [13, 0], sizes = [1, 128], strides = [1, 1]} : vector<31x128xf32> to vector<1x128xf32>
      %216 = vector.broadcast %215 : vector<1x128xf32> to vector<16x128xf32>
      %217 = arith.mulf %214, %216 : vector<16x128xf32>
      %218 = arith.addf %210, %217 : vector<16x128xf32>
      %c1_i32_98 = arith.constant 1 : i32
      %219 = arith.addi %108, %c1_i32_98 : i32
      %c14_i32 = arith.constant 14 : i32
      %220 = arith.addi %219, %c14_i32 : i32
      %221 = arith.index_cast %220 : i32 to index
      %c0_99 = arith.constant 0 : index
      %222 = vector.load %arg23[%221, %c0_99] : memref<112x128xf32, #tpu.memory_space<vmem>>, vector<16x128xf32>
      %223 = vector.extract_strided_slice %85 {offsets = [14, 0], sizes = [1, 128], strides = [1, 1]} : vector<31x128xf32> to vector<1x128xf32>
      %224 = vector.broadcast %223 : vector<1x128xf32> to vector<16x128xf32>
      %225 = arith.mulf %222, %224 : vector<16x128xf32>
      %226 = arith.addf %218, %225 : vector<16x128xf32>
      %c1_i32_100 = arith.constant 1 : i32
      %227 = arith.addi %108, %c1_i32_100 : i32
      %c15_i32 = arith.constant 15 : i32
      %228 = arith.addi %227, %c15_i32 : i32
      %229 = arith.index_cast %228 : i32 to index
      %c0_101 = arith.constant 0 : index
      %230 = vector.load %arg23[%229, %c0_101] : memref<112x128xf32, #tpu.memory_space<vmem>>, vector<16x128xf32>
      %231 = vector.extract_strided_slice %85 {offsets = [15, 0], sizes = [1, 128], strides = [1, 1]} : vector<31x128xf32> to vector<1x128xf32>
      %232 = vector.broadcast %231 : vector<1x128xf32> to vector<16x128xf32>
      %233 = arith.mulf %230, %232 : vector<16x128xf32>
      %234 = arith.addf %226, %233 : vector<16x128xf32>
      %c1_i32_102 = arith.constant 1 : i32
      %235 = arith.addi %108, %c1_i32_102 : i32
      %c16_i32_103 = arith.constant 16 : i32
      %236 = arith.addi %235, %c16_i32_103 : i32
      %237 = arith.index_cast %236 : i32 to index
      %c0_104 = arith.constant 0 : index
      %238 = vector.load %arg23[%237, %c0_104] : memref<112x128xf32, #tpu.memory_space<vmem>>, vector<16x128xf32>
      %239 = vector.extract_strided_slice %85 {offsets = [16, 0], sizes = [1, 128], strides = [1, 1]} : vector<31x128xf32> to vector<1x128xf32>
      %240 = vector.broadcast %239 : vector<1x128xf32> to vector<16x128xf32>
      %241 = arith.mulf %238, %240 : vector<16x128xf32>
      %242 = arith.addf %234, %241 : vector<16x128xf32>
      %c1_i32_105 = arith.constant 1 : i32
      %243 = arith.addi %108, %c1_i32_105 : i32
      %c17_i32 = arith.constant 17 : i32
      %244 = arith.addi %243, %c17_i32 : i32
      %245 = arith.index_cast %244 : i32 to index
      %c0_106 = arith.constant 0 : index
      %246 = vector.load %arg23[%245, %c0_106] : memref<112x128xf32, #tpu.memory_space<vmem>>, vector<16x128xf32>
      %247 = vector.extract_strided_slice %85 {offsets = [17, 0], sizes = [1, 128], strides = [1, 1]} : vector<31x128xf32> to vector<1x128xf32>
      %248 = vector.broadcast %247 : vector<1x128xf32> to vector<16x128xf32>
      %249 = arith.mulf %246, %248 : vector<16x128xf32>
      %250 = arith.addf %242, %249 : vector<16x128xf32>
      %c1_i32_107 = arith.constant 1 : i32
      %251 = arith.addi %108, %c1_i32_107 : i32
      %c18_i32 = arith.constant 18 : i32
      %252 = arith.addi %251, %c18_i32 : i32
      %253 = arith.index_cast %252 : i32 to index
      %c0_108 = arith.constant 0 : index
      %254 = vector.load %arg23[%253, %c0_108] : memref<112x128xf32, #tpu.memory_space<vmem>>, vector<16x128xf32>
      %255 = vector.extract_strided_slice %85 {offsets = [18, 0], sizes = [1, 128], strides = [1, 1]} : vector<31x128xf32> to vector<1x128xf32>
      %256 = vector.broadcast %255 : vector<1x128xf32> to vector<16x128xf32>
      %257 = arith.mulf %254, %256 : vector<16x128xf32>
      %258 = arith.addf %250, %257 : vector<16x128xf32>
      %c1_i32_109 = arith.constant 1 : i32
      %259 = arith.addi %108, %c1_i32_109 : i32
      %c19_i32 = arith.constant 19 : i32
      %260 = arith.addi %259, %c19_i32 : i32
      %261 = arith.index_cast %260 : i32 to index
      %c0_110 = arith.constant 0 : index
      %262 = vector.load %arg23[%261, %c0_110] : memref<112x128xf32, #tpu.memory_space<vmem>>, vector<16x128xf32>
      %263 = vector.extract_strided_slice %85 {offsets = [19, 0], sizes = [1, 128], strides = [1, 1]} : vector<31x128xf32> to vector<1x128xf32>
      %264 = vector.broadcast %263 : vector<1x128xf32> to vector<16x128xf32>
      %265 = arith.mulf %262, %264 : vector<16x128xf32>
      %266 = arith.addf %258, %265 : vector<16x128xf32>
      %c1_i32_111 = arith.constant 1 : i32
      %267 = arith.addi %108, %c1_i32_111 : i32
      %c20_i32 = arith.constant 20 : i32
      %268 = arith.addi %267, %c20_i32 : i32
      %269 = arith.index_cast %268 : i32 to index
      %c0_112 = arith.constant 0 : index
      %270 = vector.load %arg23[%269, %c0_112] : memref<112x128xf32, #tpu.memory_space<vmem>>, vector<16x128xf32>
      %271 = vector.extract_strided_slice %85 {offsets = [20, 0], sizes = [1, 128], strides = [1, 1]} : vector<31x128xf32> to vector<1x128xf32>
      %272 = vector.broadcast %271 : vector<1x128xf32> to vector<16x128xf32>
      %273 = arith.mulf %270, %272 : vector<16x128xf32>
      %274 = arith.addf %266, %273 : vector<16x128xf32>
      %c1_i32_113 = arith.constant 1 : i32
      %275 = arith.addi %108, %c1_i32_113 : i32
      %c21_i32 = arith.constant 21 : i32
      %276 = arith.addi %275, %c21_i32 : i32
      %277 = arith.index_cast %276 : i32 to index
      %c0_114 = arith.constant 0 : index
      %278 = vector.load %arg23[%277, %c0_114] : memref<112x128xf32, #tpu.memory_space<vmem>>, vector<16x128xf32>
      %279 = vector.extract_strided_slice %85 {offsets = [21, 0], sizes = [1, 128], strides = [1, 1]} : vector<31x128xf32> to vector<1x128xf32>
      %280 = vector.broadcast %279 : vector<1x128xf32> to vector<16x128xf32>
      %281 = arith.mulf %278, %280 : vector<16x128xf32>
      %282 = arith.addf %274, %281 : vector<16x128xf32>
      %c1_i32_115 = arith.constant 1 : i32
      %283 = arith.addi %108, %c1_i32_115 : i32
      %c22_i32 = arith.constant 22 : i32
      %284 = arith.addi %283, %c22_i32 : i32
      %285 = arith.index_cast %284 : i32 to index
      %c0_116 = arith.constant 0 : index
      %286 = vector.load %arg23[%285, %c0_116] : memref<112x128xf32, #tpu.memory_space<vmem>>, vector<16x128xf32>
      %287 = vector.extract_strided_slice %85 {offsets = [22, 0], sizes = [1, 128], strides = [1, 1]} : vector<31x128xf32> to vector<1x128xf32>
      %288 = vector.broadcast %287 : vector<1x128xf32> to vector<16x128xf32>
      %289 = arith.mulf %286, %288 : vector<16x128xf32>
      %290 = arith.addf %282, %289 : vector<16x128xf32>
      %c1_i32_117 = arith.constant 1 : i32
      %291 = arith.addi %108, %c1_i32_117 : i32
      %c23_i32 = arith.constant 23 : i32
      %292 = arith.addi %291, %c23_i32 : i32
      %293 = arith.index_cast %292 : i32 to index
      %c0_118 = arith.constant 0 : index
      %294 = vector.load %arg23[%293, %c0_118] : memref<112x128xf32, #tpu.memory_space<vmem>>, vector<16x128xf32>
      %295 = vector.extract_strided_slice %85 {offsets = [23, 0], sizes = [1, 128], strides = [1, 1]} : vector<31x128xf32> to vector<1x128xf32>
      %296 = vector.broadcast %295 : vector<1x128xf32> to vector<16x128xf32>
      %297 = arith.mulf %294, %296 : vector<16x128xf32>
      %298 = arith.addf %290, %297 : vector<16x128xf32>
      %c1_i32_119 = arith.constant 1 : i32
      %299 = arith.addi %108, %c1_i32_119 : i32
      %c24_i32 = arith.constant 24 : i32
      %300 = arith.addi %299, %c24_i32 : i32
      %301 = arith.index_cast %300 : i32 to index
      %c0_120 = arith.constant 0 : index
      %302 = vector.load %arg23[%301, %c0_120] : memref<112x128xf32, #tpu.memory_space<vmem>>, vector<16x128xf32>
      %303 = vector.extract_strided_slice %85 {offsets = [24, 0], sizes = [1, 128], strides = [1, 1]} : vector<31x128xf32> to vector<1x128xf32>
      %304 = vector.broadcast %303 : vector<1x128xf32> to vector<16x128xf32>
      %305 = arith.mulf %302, %304 : vector<16x128xf32>
      %306 = arith.addf %298, %305 : vector<16x128xf32>
      %c1_i32_121 = arith.constant 1 : i32
      %307 = arith.addi %108, %c1_i32_121 : i32
      %c25_i32 = arith.constant 25 : i32
      %308 = arith.addi %307, %c25_i32 : i32
      %309 = arith.index_cast %308 : i32 to index
      %c0_122 = arith.constant 0 : index
      %310 = vector.load %arg23[%309, %c0_122] : memref<112x128xf32, #tpu.memory_space<vmem>>, vector<16x128xf32>
      %311 = vector.extract_strided_slice %85 {offsets = [25, 0], sizes = [1, 128], strides = [1, 1]} : vector<31x128xf32> to vector<1x128xf32>
      %312 = vector.broadcast %311 : vector<1x128xf32> to vector<16x128xf32>
      %313 = arith.mulf %310, %312 : vector<16x128xf32>
      %314 = arith.addf %306, %313 : vector<16x128xf32>
      %c1_i32_123 = arith.constant 1 : i32
      %315 = arith.addi %108, %c1_i32_123 : i32
      %c26_i32 = arith.constant 26 : i32
      %316 = arith.addi %315, %c26_i32 : i32
      %317 = arith.index_cast %316 : i32 to index
      %c0_124 = arith.constant 0 : index
      %318 = vector.load %arg23[%317, %c0_124] : memref<112x128xf32, #tpu.memory_space<vmem>>, vector<16x128xf32>
      %319 = vector.extract_strided_slice %85 {offsets = [26, 0], sizes = [1, 128], strides = [1, 1]} : vector<31x128xf32> to vector<1x128xf32>
      %320 = vector.broadcast %319 : vector<1x128xf32> to vector<16x128xf32>
      %321 = arith.mulf %318, %320 : vector<16x128xf32>
      %322 = arith.addf %314, %321 : vector<16x128xf32>
      %c1_i32_125 = arith.constant 1 : i32
      %323 = arith.addi %108, %c1_i32_125 : i32
      %c27_i32 = arith.constant 27 : i32
      %324 = arith.addi %323, %c27_i32 : i32
      %325 = arith.index_cast %324 : i32 to index
      %c0_126 = arith.constant 0 : index
      %326 = vector.load %arg23[%325, %c0_126] : memref<112x128xf32, #tpu.memory_space<vmem>>, vector<16x128xf32>
      %327 = vector.extract_strided_slice %85 {offsets = [27, 0], sizes = [1, 128], strides = [1, 1]} : vector<31x128xf32> to vector<1x128xf32>
      %328 = vector.broadcast %327 : vector<1x128xf32> to vector<16x128xf32>
      %329 = arith.mulf %326, %328 : vector<16x128xf32>
      %330 = arith.addf %322, %329 : vector<16x128xf32>
      %c1_i32_127 = arith.constant 1 : i32
      %331 = arith.addi %108, %c1_i32_127 : i32
      %c28_i32 = arith.constant 28 : i32
      %332 = arith.addi %331, %c28_i32 : i32
      %333 = arith.index_cast %332 : i32 to index
      %c0_128 = arith.constant 0 : index
      %334 = vector.load %arg23[%333, %c0_128] : memref<112x128xf32, #tpu.memory_space<vmem>>, vector<16x128xf32>
      %335 = vector.extract_strided_slice %85 {offsets = [28, 0], sizes = [1, 128], strides = [1, 1]} : vector<31x128xf32> to vector<1x128xf32>
      %336 = vector.broadcast %335 : vector<1x128xf32> to vector<16x128xf32>
      %337 = arith.mulf %334, %336 : vector<16x128xf32>
      %338 = arith.addf %330, %337 : vector<16x128xf32>
      %c1_i32_129 = arith.constant 1 : i32
      %339 = arith.addi %108, %c1_i32_129 : i32
      %c29_i32 = arith.constant 29 : i32
      %340 = arith.addi %339, %c29_i32 : i32
      %341 = arith.index_cast %340 : i32 to index
      %c0_130 = arith.constant 0 : index
      %342 = vector.load %arg23[%341, %c0_130] : memref<112x128xf32, #tpu.memory_space<vmem>>, vector<16x128xf32>
      %343 = vector.extract_strided_slice %85 {offsets = [29, 0], sizes = [1, 128], strides = [1, 1]} : vector<31x128xf32> to vector<1x128xf32>
      %344 = vector.broadcast %343 : vector<1x128xf32> to vector<16x128xf32>
      %345 = arith.mulf %342, %344 : vector<16x128xf32>
      %346 = arith.addf %338, %345 : vector<16x128xf32>
      %c1_i32_131 = arith.constant 1 : i32
      %347 = arith.addi %108, %c1_i32_131 : i32
      %c30_i32 = arith.constant 30 : i32
      %348 = arith.addi %347, %c30_i32 : i32
      %349 = arith.index_cast %348 : i32 to index
      %c0_132 = arith.constant 0 : index
      %350 = vector.load %arg23[%349, %c0_132] : memref<112x128xf32, #tpu.memory_space<vmem>>, vector<16x128xf32>
      %351 = vector.extract_strided_slice %85 {offsets = [30, 0], sizes = [1, 128], strides = [1, 1]} : vector<31x128xf32> to vector<1x128xf32>
      %352 = vector.broadcast %351 : vector<1x128xf32> to vector<16x128xf32>
      %353 = arith.mulf %350, %352 : vector<16x128xf32>
      %354 = arith.addf %346, %353 : vector<16x128xf32>
      %355 = vector.broadcast %87 : vector<1x128xf32> to vector<16x128xf32>
      %356 = arith.addf %354, %355 : vector<16x128xf32>
      %cst_133 = arith.constant 0.000000e+00 : f32
      %357 = vector.broadcast %cst_133 : f32 to vector<16x128xf32>
      %358 = arith.cmpf oge, %356, %357 : vector<16x128xf32>
      %359 = vector.broadcast %89 : vector<1x128xf32> to vector<16x128xf32>
      %360 = arith.mulf %359, %356 : vector<16x128xf32>
      %361 = arith.select %358, %356, %360 : vector<16x128xi1>, vector<16x128xf32>
      %362 = arith.index_cast %108 : i32 to index
      %c0_134 = arith.constant 0 : index
      %363 = vector.load %arg24[%362, %c0_134] : memref<80x128xf32, #tpu.memory_space<vmem>>, vector<16x128xf32>
      tpu.vector_store %arg24[%362, %c0_134], %361 {strides = array<i32>} : memref<80x128xf32, #tpu.memory_space<vmem>>, vector<16x128xf32>,
    }
    %c5_i32_51 = arith.constant 5 : i32
    %c0_52 = arith.constant 0 : index
    %c0_53 = arith.constant 0 : index
    %91 = vector.load %arg24[%c0_52, %c0_53] : memref<80x128xf32, #tpu.memory_space<vmem>>, vector<80x128xf32>
    %c0_54 = arith.constant 0 : index
    %c0_55 = arith.constant 0 : index
    %c0_56 = arith.constant 0 : index
    %92 = vector.load %arg11[%c0_54, %c0_55, %c0_56] : memref<1x128x128xbf16, #tpu.memory_space<vmem>>, vector<1x128x128xbf16>
    %93 = vector.shape_cast %92 : vector<1x128x128xbf16> to vector<128x128xbf16>
    %94 = arith.truncf %91 : vector<80x128xf32> to vector<80x128xbf16>
    %cst_57 = arith.constant dense<0.000000e+00> : vector<80x128xf32>
    %95 = tpu.matmul %94, %93, %cst_57 {dimension_numbers = #tpu.dot_dimension_numbers<[1], [0], [0], [1], [0, 0, 1, 1], [], []>} : vector<80x128xbf16>, vector<128x128xbf16>, vector<80x128xf32> -> vector<80x128xf32>
    %c0_58 = arith.constant 0 : index
    %c3_59 = arith.constant 3 : index
    %c0_60 = arith.constant 0 : index
    %96 = vector.load %arg13[%c0_58, %c3_59, %c0_60] : memref<1x4x128xf32, #tpu.memory_space<vmem>>, vector<1x1x128xf32>
    %97 = vector.shape_cast %96 : vector<1x1x128xf32> to vector<1x128xf32>
    %98 = vector.broadcast %97 : vector<1x128xf32> to vector<80x128xf32>
    %99 = arith.addf %95, %98 : vector<80x128xf32>
    %100 = arith.addf %99, %3 : vector<80x128xf32>
    %c0_61 = arith.constant 0 : index
    %c0_62 = arith.constant 0 : index
    %101 = vector.load %arg22[%c0_61, %c0_62] : memref<80x128xf32, #tpu.memory_space<vmem>>, vector<80x128xf32>
    tpu.vector_store %arg22[%c0_61, %c0_62], %100 {strides = array<i32>} : memref<80x128xf32, #tpu.memory_space<vmem>>, vector<80x128xf32>,
    %c1_i32_63 = arith.constant 1 : i32
    %102 = arith.cmpi eq, %arg2, %c1_i32_63 : i32
    %103 = arith.extui %102 : i1 to i32
    %c0_i32_64 = arith.constant 0 : i32
    %104 = arith.cmpi ne, %103, %c0_i32_64 : i32
    scf.if %104 {
      %105 = vector.extract_strided_slice %100 {offsets = [32, 0], sizes = [16, 128], strides = [1, 1]} : vector<80x128xf32> to vector<16x128xf32>
      %c0_65 = arith.constant 0 : index
      %c0_66 = arith.constant 0 : index
      %106 = vector.load %arg15[%c0_65, %c0_66] : memref<1x128xf32, #tpu.memory_space<vmem>>, vector<1x128xf32>
      %c0_67 = arith.constant 0 : index
      %c0_68 = arith.constant 0 : index
      %107 = vector.load %arg16[%c0_67, %c0_68] : memref<1x128xf32, #tpu.memory_space<vmem>>, vector<1x128xf32>
      %cst_69 = arith.constant dense<0.000000e+00> : vector<16xf32>
      %108 = vector.multi_reduction <add>, %105, %cst_69 [1] : vector<16x128xf32> to vector<16xf32>
      %109 = vector.shape_cast %108 : vector<16xf32> to vector<16x1xf32>
      %cst_70 = arith.constant 3.125000e-02 : f32
      %110 = vector.broadcast %cst_70 : f32 to vector<16x1xf32>
      %111 = arith.mulf %109, %110 : vector<16x1xf32>
      %112 = arith.mulf %105, %105 : vector<16x128xf32>
      %cst_71 = arith.constant dense<0.000000e+00> : vector<16xf32>
      %113 = vector.multi_reduction <add>, %112, %cst_71 [1] : vector<16x128xf32> to vector<16xf32>
      %114 = vector.shape_cast %113 : vector<16xf32> to vector<16x1xf32>
      %cst_72 = arith.constant 3.125000e-02 : f32
      %115 = vector.broadcast %cst_72 : f32 to vector<16x1xf32>
      %116 = arith.mulf %114, %115 : vector<16x1xf32>
      %117 = arith.mulf %111, %111 : vector<16x1xf32>
      %118 = arith.subf %116, %117 : vector<16x1xf32>
      %cst_73 = arith.constant 0.000000e+00 : f32
      %119 = vector.broadcast %cst_73 : f32 to vector<16x1xf32>
      %120 = arith.maximumf %118, %119 : vector<16x1xf32>
      %121 = vector.broadcast %111 : vector<16x1xf32> to vector<16x128xf32>
      %122 = arith.subf %105, %121 : vector<16x128xf32>
      %cst_74 = arith.constant 9.99999974E-6 : f32
      %123 = vector.broadcast %cst_74 : f32 to vector<16x1xf32>
      %124 = arith.addf %120, %123 : vector<16x1xf32>
      %125 = math.rsqrt %124 : vector<16x1xf32>
      %126 = vector.broadcast %125 : vector<16x1xf32> to vector<16x128xf32>
      %127 = arith.mulf %122, %126 : vector<16x128xf32>
      %128 = vector.broadcast %106 : vector<1x128xf32> to vector<16x128xf32>
      %129 = arith.mulf %127, %128 : vector<16x128xf32>
      %130 = vector.broadcast %107 : vector<1x128xf32> to vector<16x128xf32>
      %131 = arith.addf %129, %130 : vector<16x128xf32>
      %c0_75 = arith.constant 0 : index
      %c0_76 = arith.constant 0 : index
      %132 = vector.load %arg17[%c0_75, %c0_76] : memref<128x128xbf16, #tpu.memory_space<vmem>>, vector<128x128xbf16>
      %133 = arith.truncf %131 : vector<16x128xf32> to vector<16x128xbf16>
      %cst_77 = arith.constant dense<0.000000e+00> : vector<16x128xf32>
      %134 = tpu.matmul %133, %132, %cst_77 {dimension_numbers = #tpu.dot_dimension_numbers<[1], [0], [0], [1], [0, 0, 1, 1], [], []>} : vector<16x128xbf16>, vector<128x128xbf16>, vector<16x128xf32> -> vector<16x128xf32>
      %c0_78 = arith.constant 0 : index
      %c0_79 = arith.constant 0 : index
      %135 = vector.load %arg18[%c0_78, %c0_79] : memref<1x128xf32, #tpu.memory_space<vmem>>, vector<1x128xf32>
      %136 = vector.broadcast %135 : vector<1x128xf32> to vector<16x128xf32>
      %137 = arith.addf %134, %136 : vector<16x128xf32>
      %c0_80 = arith.constant 0 : index
      %c0_81 = arith.constant 0 : index
      %c0_82 = arith.constant 0 : index
      %138 = vector.load %arg19[%c0_80, %c0_81, %c0_82] : memref<1x16x128xf32, #tpu.memory_space<vmem>>, vector<1x16x128xf32>
      %139 = vector.shape_cast %138 : vector<1x16x128xf32> to vector<16x128xf32>
      %140 = vector.shape_cast %137 : vector<16x128xf32> to vector<1x16x128xf32>
      tpu.vector_store %arg19[%c0_80, %c0_81, %c0_82], %140 {strides = array<i32>} : memref<1x16x128xf32, #tpu.memory_space<vmem>>, vector<1x16x128xf32>,
    } else {
    }
    return
  }
  func.func @transform_2(%arg0: i32, %arg1: i32, %arg2: i32) -> (i32, i32, i32) {
    %c2_i32 = arith.constant 2 : i32
    %0 = arith.muli %arg2, %c2_i32 : i32
    %1 = arith.addi %0, %arg0 : i32
    %c0_i32 = arith.constant 0 : i32
    %c0_i32_0 = arith.constant 0 : i32
    %c0_i32_1 = arith.constant 0 : i32
    return %1, %c0_i32, %c0_i32_0 : i32, i32, i32
  }
  func.func @transform_3(%arg0: i32, %arg1: i32, %arg2: i32) -> (i32, i32) {
    %c0_i32 = arith.constant 0 : i32
    %c0_i32_0 = arith.constant 0 : i32
    %c0_i32_1 = arith.constant 0 : i32
    return %c0_i32, %c0_i32_0 : i32, i32
  }
  func.func @transform_4(%arg0: i32, %arg1: i32, %arg2: i32) -> (i32, i32) {
    %c0_i32 = arith.constant 0 : i32
    %c0_i32_0 = arith.constant 0 : i32
    %c0_i32_1 = arith.constant 0 : i32
    return %c0_i32, %c0_i32_0 : i32, i32
  }
  func.func @transform_5(%arg0: i32, %arg1: i32, %arg2: i32) -> (i32, i32, i32) {
    %c0_i32 = arith.constant 0 : i32
    %c0_i32_0 = arith.constant 0 : i32
    %c0_i32_1 = arith.constant 0 : i32
    return %arg2, %c0_i32, %c0_i32_0 : i32, i32, i32
  }
  func.func @transform_6(%arg0: i32, %arg1: i32, %arg2: i32) -> (i32, i32, i32) {
    %c0_i32 = arith.constant 0 : i32
    %c0_i32_0 = arith.constant 0 : i32
    %c0_i32_1 = arith.constant 0 : i32
    return %arg2, %c0_i32, %c0_i32_0 : i32, i32, i32
  }
  func.func @transform_7(%arg0: i32, %arg1: i32, %arg2: i32) -> (i32, i32, i32) {
    %c0_i32 = arith.constant 0 : i32
    %c0_i32_0 = arith.constant 0 : i32
    %c0_i32_1 = arith.constant 0 : i32
    return %arg2, %c0_i32, %c0_i32_0 : i32, i32, i32
  }
  func.func @transform_8(%arg0: i32, %arg1: i32, %arg2: i32) -> (i32, i32, i32) {
    %c0_i32 = arith.constant 0 : i32
    %c0_i32_0 = arith.constant 0 : i32
    %c0_i32_1 = arith.constant 0 : i32
    return %arg2, %c0_i32, %c0_i32_0 : i32, i32, i32
  }
  func.func @transform_9(%arg0: i32, %arg1: i32, %arg2: i32) -> (i32, i32, i32) {
    %c0_i32 = arith.constant 0 : i32
    %c0_i32_0 = arith.constant 0 : i32
    %c0_i32_1 = arith.constant 0 : i32
    return %arg2, %c0_i32, %c0_i32_0 : i32, i32, i32
  }
  func.func @transform_10(%arg0: i32, %arg1: i32, %arg2: i32) -> (i32, i32, i32) {
    %c0_i32 = arith.constant 0 : i32
    %c0_i32_0 = arith.constant 0 : i32
    %c0_i32_1 = arith.constant 0 : i32
    return %arg2, %c0_i32, %c0_i32_0 : i32, i32, i32
  }
  func.func @transform_11(%arg0: i32, %arg1: i32, %arg2: i32) -> (i32, i32, i32) {
    %c0_i32 = arith.constant 0 : i32
    %c0_i32_0 = arith.constant 0 : i32
    %c0_i32_1 = arith.constant 0 : i32
    return %arg2, %c0_i32, %c0_i32_0 : i32, i32, i32
  }
  func.func @transform_12(%arg0: i32, %arg1: i32, %arg2: i32) -> (i32, i32) {
    %c0_i32 = arith.constant 0 : i32
    %c0_i32_0 = arith.constant 0 : i32
    %c0_i32_1 = arith.constant 0 : i32
    return %c0_i32, %c0_i32_0 : i32, i32
  }
  func.func @transform_13(%arg0: i32, %arg1: i32, %arg2: i32) -> (i32, i32) {
    %c0_i32 = arith.constant 0 : i32
    %c0_i32_0 = arith.constant 0 : i32
    %c0_i32_1 = arith.constant 0 : i32
    return %c0_i32, %c0_i32_0 : i32, i32
  }
  func.func @transform_14(%arg0: i32, %arg1: i32, %arg2: i32) -> (i32, i32) {
    %c0_i32 = arith.constant 0 : i32
    %c0_i32_0 = arith.constant 0 : i32
    %c0_i32_1 = arith.constant 0 : i32
    return %c0_i32, %c0_i32_0 : i32, i32
  }
  func.func @transform_15(%arg0: i32, %arg1: i32, %arg2: i32) -> (i32, i32) {
    %c0_i32 = arith.constant 0 : i32
    %c0_i32_0 = arith.constant 0 : i32
    %c0_i32_1 = arith.constant 0 : i32
    return %c0_i32, %c0_i32_0 : i32, i32
  }
  func.func @transform_16(%arg0: i32, %arg1: i32, %arg2: i32) -> (i32, i32, i32) {
    %c0_i32 = arith.constant 0 : i32
    %c0_i32_0 = arith.constant 0 : i32
    return %arg0, %arg1, %c0_i32 : i32, i32, i32
  }
}

</mosaic_0001>

<bundles_post_ra>
// kernel: lynxnet_forward.1
= control target key start
LH: loop header
LB: loop body
LE: loop exit
PB: predicated region body
PF: predicated region fallthrough
CT: control target
= control target key end

     0   :  { %s3673_s21 = smov 0   ;;  %s3675_s22 = smov 0   ;;  %s4364_s0 = inlined_call_operand.vmem [shape: f32[2,80,128], index: 0, kind: input, shape index: {}]   ;;  %s4365_s1 = inlined_call_operand.vmem [shape: f32[2,80,128], index: 1, kind: input, shape index: {}]   ;;  %s4366_s2 = inlined_call_operand.vmem [shape: f32[4,1,128], index: 2, kind: input, shape index: {}]   ;;  %s4367_s3 = inlined_call_operand.vmem [shape: bf16[128,128], index: 3, kind: input, shape index: {}]   ;;  %s4368_s4 = inlined_call_operand.vmem [shape: f32[1,128], index: 4, kind: input, shape index: {}]   ;;  %s4369_s5 = inlined_call_operand.vmem [shape: bf16[2,128,128], index: 5, kind: input, shape index: {}]   ;;  %s4370_s6 = inlined_call_operand.vmem [shape: bf16[2,128,128], index: 6, kind: input, shape index: {}]   ;;  %s4371_s7 = inlined_call_operand.vmem [shape: bf16[2,128,128], index: 7, kind: input, shape index: {}]   ;;  %s4372_s8 = inlined_call_operand.vmem [shape: bf16[2,128,128], index: 8, kind: input, shape index: {}]   ;;  %s4373_s9 = inlined_call_operand.vmem [shape: f32[2,31,128], index: 9, kind: input, shape index: {}]   ;;  %s4374_s10 = inlined_call_operand.vmem [shape: f32[2,4,128], index: 10, kind: input, shape index: {}]   ;;  %s4375_s11 = inlined_call_operand.vmem [shape: f32[2,4,128], index: 11, kind: input, shape index: {}]   ;;  %s4376_s12 = inlined_call_operand.vmem [shape: f32[1,128], index: 12, kind: input, shape index: {}]   ;;  %s4377_s13 = inlined_call_operand.vmem [shape: f32[1,128], index: 13, kind: input, shape index: {}]   ;;  %s4378_s14 = inlined_call_operand.vmem [shape: bf16[128,128], index: 14, kind: input, shape index: {}]   ;;  %s4379_s15 = inlined_call_operand.vmem [shape: f32[1,128], index: 15, kind: input, shape index: {}]   ;;  %s4380_s16 = inlined_call_operand.vmem [shape: f32[2,16,128], index: 16, kind: output, shape index: {}]  }
   0x1   :  { %4385 = sst [smem:[#allocation17_spill]] %s4364_s0  ;;  %s3677_s23 = smov 0  }
   0x2   :  { %4386 = sst [smem:[#allocation18_spill]] %s4368_s4  ;;  %s3679_s24 = smov 0  }
   0x3   :  { %4387 = sst [smem:[#allocation19_spill]] %s4369_s5  ;;  %s3681_s25 = smov 0  }
   0x4   :  { %4388 = sst [smem:[#allocation20_spill]] %s4370_s6 }
   0x5   :  { %4389 = sst [smem:[#allocation21_spill]] %s4371_s7 }
   0x6   :  { %4390 = sst [smem:[#allocation22_spill]] %s4376_s12 }
   0x7   :  { %4391 = sst [smem:[#allocation23_spill]] %s4377_s13 }
   0x8   :  { %4392 = sst [smem:[#allocation24_spill]] %s4378_s14 }
   0x9   :  { %4393 = sst [smem:[#allocation25_spill]] %s4379_s15 }
   0xa LB: > { %4394 = sst [smem:[#allocation12_spill]] %s3568_s23  ;;  %s38_s26 = sadd.s32 1, %s3568_s23  ;;  %s3576_s25 = sphi %s3681_s25, %s26_s25   ;;  %s3572_s24 = sphi %s3679_s24, %s4413_s24   ;;  %s3568_s23 = sphi %s3677_s23, %s4412_s23   ;;  %s3564_s22 = sphi %s3675_s22, %s4411_s22   ;;  %s3560_s21 = sphi %s3673_s21, %s4410_s21  }
   0xb   : > { %4395 = sst [smem:[#allocation13_spill]] %s3572_s24  ;;  %s45_s27 = sadd.s32 1, %s3572_s24 }
   0xc   : > { %4396 = sst [smem:[#allocation14_spill]] %s3576_s25  ;;  %p39_p0 = scmp.ge.s32.totalorder %s38_s26, 2 }
   0xd   : > { %p2893_p1 = scmp.ge.s32.totalorder %s3576_s25, 1  ;;  %p509_p2 = scmp.lt.s32.totalorder %s3576_s25, 5 }
   0xe   : > { %s4415_s26 = smov (%p39_p0, %s38_s26), 0  ;;  %s4417_s27 = smov (!%p39_p0, %s45_s27), %s3572_s24 }
   0xf   : > { %4397 = sst [smem:[#allocation15_spill]] %s4415_s26  ;;  %p510_p3 = pnand %p2893_p1, %p509_p2 }
  0x10   : > { %p47_p4 = scmp.ge.s32.totalorder %s4417_s27, 2  ;;  %s2894_s28 = sshll.u32 (!%p510_p3), %s3560_s21, 1 }
  0x11   : > { %513 = sbr.rel (%p510_p3) target bundleno = 1739 (0x6cb), region = 76  ;;  %p599_p5 = scmp.lt.s32.totalorder (!%p510_p3), %s3560_s21, 1 }
  0x12   : > { %s4419_s27 = smov (%p47_p4, %s4417_s27), 0  ;;  %s593_s29 = sadd.s32 (!%p510_p3), %s3564_s22, %s2894_s28 }
  0x13   : > { %4398 = sst [smem:[#allocation16_spill]] %s4419_s27  ;;  %p594_p6 = scmp.lt.s32.totalorder (!%p510_p3), %s593_s29, 3 }
  0x14   : > { %p633_p7 = scmp.lt.s32.totalorder (!%p510_p3), %s3564_s22, 1  ;;  %s4399_s5 = sld [smem:[#allocation19_spill]] (!%p510_p3) }
  0x15   : > { %s4400_s6 = sld [smem:[#allocation20_spill]] (!%p510_p3)  ;;  %s4401_s7 = sld [smem:[#allocation21_spill]] (!%p510_p3) }
  0x16   : > { %p2909_p8 = scmp.ne.s32.totalorder (!%p510_p3), %s3560_s21, 0 }
  0x18   : > { %s600_s30 = scalar_select %p599_p5, %s3560_s21, 1 }
  0x19   : > { %s4421_s29 = smov (!%p594_p6, %s593_s29), 3  ;;  %s4402_s19 = sld [smem:[#allocation17_spill]] (!%p2909_p8) }
  0x1a   : > { %s3080_s0 = sshll.u32 %s600_s30, 6  ;;  %s3084_s17 = sshll.u32 %s600_s30, 5 }
  0x1b   : > { %s3721_s24 = scalar_lea.vmem %s4399_s5, %s3080_s0  ;;  %s3726_s25 = scalar_lea.vmem %s4400_s6, %s3080_s0 }
  0x1c   : > { %s3731_s12 = scalar_lea.vmem %s4401_s7, %s3080_s0  ;;  %s3736_s18 = scalar_lea.vmem %s4372_s8, %s3080_s0 }
  0x1d   : > { %s3741_s26 = scalar_lea.vmem %s4373_s9, %s3084_s17  ;;  %s2905_s27 = sshll.u32 %s600_s30, 2 }
  0x1e   : > { %s3746_s28 = scalar_lea.vmem %s4374_s10, %s2905_s27  ;;  %s3751_s15 = scalar_lea.vmem %s4375_s11, %s2905_s27 }
  0x1f   : > { %s634_s4 = scalar_select %p633_p7, %s3564_s22, 1 }
  0x20   : > { %646 = sbr.rel (%p2909_p8) target bundleno = 335 (0x14f), region = 80 }
  0x21   : > { %s3085_s14 = sshll.u32 %s634_s4, 4  ;;  %s648_s5 = smul.u32 (!%p2909_p8), 80, %s3564_s22 }
  0x22   : > { %s3759_s20 = scalar_lea.vmem %s4380_s16, %s3085_s14 }
  0x23   : > { %s650_s23 = scalar_lea.vmem (!%p2909_p8), %s4402_s19, %s648_s5 }
  0x24   : > { %v3766_v0 = vld [vmem:[%s650_s23] sm:$0xff] (!%p2909_p8)  ;;  %v3768_v1 = vld [vmem:[%s650_s23 + $0x8] sm:$0xff] (!%p2909_p8)  ;;  %v3770_v2 = vld [vmem:[%s650_s23 + $0x10] sm:$0xff] (!%p2909_p8) }
  0x25   : > { %v3772_v3 = vld [vmem:[%s650_s23 + $0x18] sm:$0xff] (!%p2909_p8)  ;;  %v3774_v4 = vld [vmem:[%s650_s23 + $0x20] sm:$0xff] (!%p2909_p8)  ;;  %v3776_v5 = vld [vmem:[%s650_s23 + $0x28] sm:$0xff] (!%p2909_p8) }
  0x26   : > { %v3778_v6 = vld [vmem:[%s650_s23 + $0x30] sm:$0xff] (!%p2909_p8)  ;;  %v3780_v7 = vld [vmem:[%s650_s23 + $0x38] sm:$0xff] (!%p2909_p8)  ;;  %v3782_v8 = vld [vmem:[%s650_s23 + $0x40] sm:$0xff] (!%p2909_p8) }
  0x27   : > { %v3784_v9 = vld [vmem:[%s650_s23 + $0x48] sm:$0xff] }
  0x28   : > { %710 = vsyncadd [#allocation7], 1280  ;;  %s711_s22 = scalar_lea.vmem %s4365_s1, %s648_s5 }
  0x29   : > { %v745_v10 = vld [vmem:[%s711_s22] sm:$0xff]  ;;  %v747_v11 = vld [vmem:[%s711_s22 + $0x8] sm:$0xff]  ;;  %v749_v12 = vld [vmem:[%s711_s22 + $0x10] sm:$0xff] }
  0x2a   : > { %746 = vst [vmem:[#allocation3] sm:$0xff] %v745_v10  ;;  %748 = vst [vmem:[#allocation3 + $0x8] sm:$0xff] %v747_v11  ;;  %v751_v13 = vld [vmem:[%s711_s22 + $0x18] sm:$0xff]  ;;  %v753_v14 = vld [vmem:[%s711_s22 + $0x20] sm:$0xff] }
  0x2b   : > { %750 = vst [vmem:[#allocation3 + $0x10] sm:$0xff] %v749_v12  ;;  %v755_v15 = vld [vmem:[%s711_s22 + $0x28] sm:$0xff]  ;;  %752 = vst [vmem:[#allocation3 + $0x18] sm:$0xff] %v751_v13  ;;  %v757_v16 = vld [vmem:[%s711_s22 + $0x30] sm:$0xff] }
  0x2c   : > { %754 = vst [vmem:[#allocation3 + $0x20] sm:$0xff] %v753_v14  ;;  %756 = vst [vmem:[#allocation3 + $0x28] sm:$0xff] %v755_v15  ;;  %v759_v17 = vld [vmem:[%s711_s22 + $0x38] sm:$0xff]  ;;  %v761_v18 = vld [vmem:[%s711_s22 + $0x40] sm:$0xff] }
  0x2d   : > { %758 = vst [vmem:[#allocation3 + $0x30] sm:$0xff] %v757_v16  ;;  %760 = vst [vmem:[#allocation3 + $0x38] sm:$0xff] %v759_v17  ;;  %v763_v19 = vld [vmem:[%s711_s22 + $0x48] sm:$0xff] }
  0x2e   : > { %762 = vst [vmem:[#allocation3 + $0x40] sm:$0xff] %v761_v18  ;;  %764 = vst [vmem:[#allocation3 + $0x48] sm:$0xff] %v763_v19 }
  0x2f   : > { %772 = vsyncadd [#allocation7 + $0x1], 1280 }
  0x30   : > { %3554 = dma.done.wait [#allocation7], 1280 }
  0x31   : > { %3555 = vsyncadd [#allocation7], 4294966016 }
  0x32   : > { %3556 = dma.done.wait [#allocation7 + $0x1], 1280 }
  0x33   : > { %3557 = vsyncadd [#allocation7 + $0x1], 4294966016  ;;  %v3582_v20 = vmov 0.0   ;;  %vm3583_vm0 = vmmov 0   ;;  %v3430_v21 = vld [vmem:[%s4367_s3] sm:$0xff]   ;;  %v3431_v22 = vld [vmem:[%s4367_s3 + $0x8] sm:$0xff]   ;;  %v804_v29 = vpack.c.bf16 %v3768_v1, %v3766_v0  ;;  %v807_v30 = vpack.c.bf16 %v3780_v7, %v3778_v6 }
  0x34   : > { %3160 = vmatprep.subr.bf16.mxu0 %v3582_v20  ;;  %997 = vst [vmem:[#allocation5] sm:$0xff] %v3582_v20  ;;  %998 = vst [vmem:[#allocation5 + $0x8] sm:$0xff] %v3582_v20  ;;  %3360 = vmatprep.subr.bf16.mxu1 %v3582_v20  ;;  %v3432_v23 = vld [vmem:[%s4367_s3 + $0x10] sm:$0xff]   ;;  %v3433_v24 = vld [vmem:[%s4367_s3 + $0x18] sm:$0xff]   ;;  %v805_v31 = vpack.c.bf16 %v3772_v3, %v3770_v2  ;;  %v808_v32 = vpack.c.bf16 %v3784_v9, %v3782_v8  ;;  %s4403_s5 = sld [smem:[#allocation18_spill]] }
  0x35   : > { %999 = vst [vmem:[#allocation5 + $0x60] sm:$0xff] %v3582_v20  ;;  %1000 = vst [vmem:[#allocation5 + $0x68] sm:$0xff] %v3582_v20  ;;  %3176 = vmatprep.mubr.msk.bf16.mxu0 %vm3583_vm0, %v3582_v20  ;;  %3188 = vmatprep.mubr.msk.bf16.mxu1 %vm3583_vm0, %v3582_v20  ;;  %v3434_v25 = vld [vmem:[%s4367_s3 + $0x20] sm:$0xff]   ;;  %v3435_v26 = vld [vmem:[%s4367_s3 + $0x28] sm:$0xff]   ;;  %v806_v33 = vpack.c.bf16 %v3776_v5, %v3774_v4 }
  0x36   : > { %3161 = vmatpush3.bf16.msra.mxu0 %v3430_v21  ;;  %3368 = vmatpush3.bf16.msra.mxu1 %v3430_v21  ;;  %v3436_v27 = vld [vmem:[%s4367_s3 + $0x30] sm:$0xff]   ;;  %v3437_v28 = vld [vmem:[%s4367_s3 + $0x38] sm:$0xff]  }
  0x37   : > { %3162 = vmatprep.subr.bf16.mxu0 %v3582_v20  ;;  %3361 = vmatprep.subr.bf16.mxu1 %v3582_v20 }
  0x3a   : > { %3163 = vmatpush3.bf16.msra.mxu0 %v3431_v22  ;;  %3369 = vmatpush3.bf16.msra.mxu1 %v3431_v22  ;;  %v2910_v34 = vld [vmem:[%s4403_s5] ss:$0 sm:$0xff] }
  0x3b   : > { %3164 = vmatprep.subr.bf16.mxu0 %v3582_v20  ;;  %3362 = vmatprep.subr.bf16.mxu1 %v3582_v20 }
  0x3e   : > { %3165 = vmatpush3.bf16.msra.mxu0 %v3432_v23  ;;  %3370 = vmatpush3.bf16.msra.mxu1 %v3432_v23 }
  0x3f   : > { %3166 = vmatprep.subr.bf16.mxu0 %v3582_v20  ;;  %3363 = vmatprep.subr.bf16.mxu1 %v3582_v20 }
  0x42   : > { %3167 = vmatpush3.bf16.msra.mxu0 %v3433_v24  ;;  %3371 = vmatpush3.bf16.msra.mxu1 %v3433_v24 }
  0x43   : > { %3168 = vmatprep.subr.bf16.mxu0 %v3582_v20  ;;  %3364 = vmatprep.subr.bf16.mxu1 %v3582_v20 }
  0x46   : > { %3169 = vmatpush3.bf16.msra.mxu0 %v3434_v25  ;;  %3372 = vmatpush3.bf16.msra.mxu1 %v3434_v25 }
  0x47   : > { %3170 = vmatprep.subr.bf16.mxu0 %v3582_v20  ;;  %3365 = vmatprep.subr.bf16.mxu1 %v3582_v20 }
  0x4a   : > { %3171 = vmatpush3.bf16.msra.mxu0 %v3435_v26  ;;  %3373 = vmatpush3.bf16.msra.mxu1 %v3435_v26 }
  0x4b   : > { %3172 = vmatprep.subr.bf16.mxu0 %v3582_v20  ;;  %3366 = vmatprep.subr.bf16.mxu1 %v3582_v20 }
  0x4e   : > { %3173 = vmatpush3.bf16.msra.mxu0 %v3436_v27  ;;  %3374 = vmatpush3.bf16.msra.mxu1 %v3436_v27 }
  0x4f   : > { %3174 = vmatprep.subr.bf16.mxu0 %v3582_v20  ;;  %3367 = vmatprep.subr.bf16.mxu1 %v3582_v20 }
  0x52   : > { %3175 = vmatpush3.bf16.msra.mxu0 %v3437_v28  ;;  %3375 = vmatpush3.bf16.msra.mxu1 %v3437_v28 }
  0x55   : > { %3177 = vmatmul.mubr.bf16.vlgmr.msra.gmra.mrb[0].mxu0 %v804_v29  ;;  %3189 = vmatmul.mubr.bf16.vlgmr.msra.gmra.mrb[0].mxu1 %v807_v30 }
  0x56   : > { %3180 = vmatprep.mubr.msk.bf16.mxu0 %vm3583_vm0, %v3582_v20  ;;  %3192 = vmatprep.mubr.msk.bf16.mxu1 %vm3583_vm0, %v3582_v20 }
  0x5d   : > { %3181 = vmatmul.mubr.bf16.gmra.mrb[4].mxu0 %v805_v31  ;;  %3193 = vmatmul.mubr.bf16.gmra.mrb[4].mxu1 %v808_v32 }
  0x5e   : > { %3184 = vmatprep.mubr.msk.bf16.mxu0 %vm3583_vm0, %v3582_v20 }
  0x65   : > { %3185 = vmatmul.mubr.bf16.gmra.mrb[8].mxu0 %v806_v33 }
 0x128   : > { %v898_v35 = vpop.f32.mrb[0].mxu0  ;;  %v922_v36 = vpop.f32.mrb[0].mxu1 }
 0x129   : > { %v899_v37 = vadd.f32 %v2910_v34, %v898_v35  ;;  %v923_v38 = vadd.f32 %v2910_v34, %v922_v36  ;;  %v3178_v39 = vpop.f32.mrb[1].mxu0  ;;  %v3190_v40 = vpop.f32.mrb[1].mxu1 }
 0x12a   : > { %v901_v41 = vpop.f32.mrb[2].mxu0  ;;  %v925_v42 = vpop.f32.mrb[2].mxu1 }
 0x12b   : > { %v947_v43 = vmul.f32 0.70710677, %v899_v37  ;;  %v953_v44 = vmul.f32 0.70710677, %v923_v38  ;;  %v902_v45 = vadd.f32 %v2910_v34, %v901_v41  ;;  %v926_v46 = vadd.f32 %v2910_v34, %v925_v42  ;;  %v3179_v47 = vpop.f32.mrb[3].mxu0  ;;  %v3191_v48 = vpop.f32.mrb[3].mxu1 }
 0x12c   : > { %v937_v5 = vmul.f32 0.5, %v899_v37  ;;  %v943_v8 = vmul.f32 0.5, %v923_v38 }
 0x12d   : > { %3438 = verf.f32 %v947_v43  ;;  %v948_v49 = vmul.f32 0.70710677, %v902_v45  ;;  %v954_v50 = vmul.f32 0.70710677, %v926_v46  ;;  %v938_v17 = vmul.f32 0.5, %v902_v45 }
 0x12e   : > { %3440 = verf.f32 %v953_v44  ;;  %v944_v21 = vmul.f32 0.5, %v926_v46 }
 0x12f   : > { %3442 = verf.f32 %v948_v49 }
 0x130   : > { %v906_v51 = vpop.f32.mrb[4].mxu0  ;;  %v930_v52 = vpop.f32.mrb[4].mxu1  ;;  %3444 = verf.f32 %v954_v50 }
 0x131   : > { %v907_v53 = vadd.f32 %v2910_v34, %v906_v51  ;;  %v931_v54 = vadd.f32 %v2910_v34, %v930_v52  ;;  %v3182_v55 = vpop.f32.mrb[5].mxu0  ;;  %v3194_v56 = vpop.f32.mrb[5].mxu1 }
 0x132   : > { %v909_v57 = vpop.f32.mrb[6].mxu0  ;;  %v933_v58 = vpop.f32.mrb[6].mxu1 }
 0x133   : > { %v949_v59 = vmul.f32 0.70710677, %v907_v53  ;;  %v955_v60 = vmul.f32 0.70710677, %v931_v54  ;;  %v910_v61 = vadd.f32 %v2910_v34, %v909_v57  ;;  %v934_v62 = vadd.f32 %v2910_v34, %v933_v58  ;;  %v3183_v63 = vpop.f32.mrb[7].mxu0  ;;  %v3195_v0 = vpop.f32.mrb[7].mxu1 }
 0x134   : > { %v939_v29 = vmul.f32 0.5, %v907_v53  ;;  %v945_v31 = vmul.f32 0.5, %v931_v54 }
 0x135   : > { %3446 = verf.f32 %v949_v59  ;;  %v950_v1 = vmul.f32 0.70710677, %v910_v61  ;;  %v956_v3 = vmul.f32 0.70710677, %v934_v62  ;;  %v940_v38 = vmul.f32 0.5, %v910_v61 }
 0x136   : > { %3448 = verf.f32 %v955_v60  ;;  %v946_v39 = vmul.f32 0.5, %v934_v62 }
 0x137   : > { %v3439_v2 = vpop.eup %3438  ;;  %3450 = verf.f32 %v950_v1 }
 0x138   : > { %v3441_v4 = vpop.eup %3440  ;;  %v967_v6 = vadd.f32 1.0, %v3439_v2  ;;  %v914_v7 = vpop.f32.mrb[8].mxu0  ;;  %3452 = verf.f32 %v956_v3 }
 0x139   : > { %v973_v9 = vadd.f32 1.0, %v3441_v4  ;;  %v915_v10 = vadd.f32 %v2910_v34, %v914_v7  ;;  %v3186_v11 = vpop.f32.mrb[9].mxu0  ;;  %v3443_v12 = vpop.eup %3442 }
 0x13a   : > { %v977_v13 = vmul.f32 %v967_v6, %v937_v5  ;;  %v917_v14 = vpop.f32.mrb[10].mxu0  ;;  %v3445_v15 = vpop.eup %3444  ;;  %v968_v18 = vadd.f32 1.0, %v3443_v12 }
 0x13b   : > { %v983_v16 = vmul.f32 %v973_v9, %v943_v8  ;;  %v951_v19 = vmul.f32 0.70710677, %v915_v10  ;;  %v3187_v20 = vpop.f32.mrb[11].mxu0  ;;  %v974_v22 = vadd.f32 1.0, %v3445_v15  ;;  %v918_v23 = vadd.f32 %v2910_v34, %v917_v14 }
 0x13c   : > { %987 = vst [vmem:[#allocation4] sm:$0xff] %v977_v13  ;;  %v978_v24 = vmul.f32 %v968_v18, %v938_v17  ;;  %v941_v44 = vmul.f32 0.5, %v915_v10 }
 0x13d   : > { %993 = vst [vmem:[#allocation4 + $0x30] sm:$0xff] %v983_v16  ;;  %3454 = verf.f32 %v951_v19  ;;  %v984_v25 = vmul.f32 %v974_v22, %v944_v21  ;;  %v952_v26 = vmul.f32 0.70710677, %v918_v23  ;;  %v942_v48 = vmul.f32 0.5, %v918_v23 }
 0x13e   : > { %988 = vst [vmem:[#allocation4 + $0x8] sm:$0xff] %v978_v24 }
 0x13f   : > { %v3447_v27 = vpop.eup %3446  ;;  %994 = vst [vmem:[#allocation4 + $0x38] sm:$0xff] %v984_v25  ;;  %3456 = verf.f32 %v952_v26 }
 0x140   : > { %v3449_v28 = vpop.eup %3448  ;;  %v969_v30 = vadd.f32 1.0, %v3447_v27 }
 0x141   : > { %v975_v32 = vadd.f32 1.0, %v3449_v28  ;;  %v3451_v33 = vpop.eup %3450 }
 0x142   : > { %v979_v35 = vmul.f32 %v969_v30, %v939_v29  ;;  %v3453_v36 = vpop.eup %3452  ;;  %v970_v34 = vadd.f32 1.0, %v3451_v33 }
 0x143   : > { %v985_v37 = vmul.f32 %v975_v32, %v945_v31  ;;  %v976_v40 = vadd.f32 1.0, %v3453_v36 }
 0x144   : > { %989 = vst [vmem:[#allocation4 + $0x10] sm:$0xff] %v979_v35  ;;  %v980_v41 = vmul.f32 %v970_v34, %v940_v38 }
 0x145   : > { %995 = vst [vmem:[#allocation4 + $0x40] sm:$0xff] %v985_v37  ;;  %v986_v42 = vmul.f32 %v976_v40, %v946_v39 }
 0x146   : > { %990 = vst [vmem:[#allocation4 + $0x18] sm:$0xff] %v980_v41 }
 0x147   : > { %v3455_v43 = vpop.eup %3454  ;;  %996 = vst [vmem:[#allocation4 + $0x48] sm:$0xff] %v986_v42 }
 0x148   : > { %v971_v45 = vadd.f32 1.0, %v3455_v43 }
 0x149   : > { %v3457_v46 = vpop.eup %3456 }
 0x14a   : > { %v981_v47 = vmul.f32 %v971_v45, %v941_v44  ;;  %v972_v49 = vadd.f32 1.0, %v3457_v46 }
 0x14c   : > { %991 = vst [vmem:[#allocation4 + $0x20] sm:$0xff] %v981_v47  ;;  %v982_v50 = vmul.f32 %v972_v49, %v942_v48 }
 0x14e   : > { %992 = vst [vmem:[#allocation4 + $0x28] sm:$0xff] %v982_v50 }
 0x14f PF: > { %v3458_v51 = vld [vmem:[%s3721_s24] sm:$0xff]   ;;  %v3584_v52 = vmov 0.0   ;;  %v3459_v53 = vld [vmem:[%s3721_s24 + $0x8] sm:$0xff]   ;;  %vm3585_vm1 = vmmov 0   ;;  %v3460_v54 = vld [vmem:[%s3721_s24 + $0x10] sm:$0xff]   ;;  %s4404_s17 = scalar_lea.vmem %s4366_s2, %s4421_s29 }
 0x150   : > { %3196 = vmatprep.subr.bf16.mxu0 %v3584_v52  ;;  %1828 = vst [vmem:[#allocation5 + $0x10] sm:$0xff] %v3584_v52  ;;  %1829 = vst [vmem:[#allocation5 + $0x18] sm:$0xff] %v3584_v52  ;;  %3232 = vmatprep.subr.bf16.mxu1 %v3584_v52  ;;  %v3461_v55 = vld [vmem:[%s3721_s24 + $0x18] sm:$0xff]   ;;  %v3462_v56 = vld [vmem:[%s3721_s24 + $0x20] sm:$0xff]  }
 0x151   : > { %1830 = vst [vmem:[#allocation5 + $0x20] sm:$0xff] %v3584_v52  ;;  %1831 = vst [vmem:[#allocation5 + $0x28] sm:$0xff] %v3584_v52  ;;  %3197 = vmatpush3.bf16.msra.mxu0 %v3458_v51  ;;  %3212 = vmatprep.mubr.msk.bf16.mxu0 %vm3585_vm1, %v3584_v52  ;;  %v3463_v57 = vld [vmem:[%s3721_s24 + $0x28] sm:$0xff]   ;;  %v3464_v58 = vld [vmem:[%s3721_s24 + $0x30] sm:$0xff]  }
 0x152   : > { %1834 = vst [vmem:[#allocation5 + $0x40] sm:$0xff] %v3584_v52  ;;  %1835 = vst [vmem:[#allocation5 + $0x48] sm:$0xff] %v3584_v52  ;;  %3198 = vmatprep.subr.bf16.mxu0 %v3584_v52  ;;  %3248 = vmatprep.mubr.msk.bf16.mxu1 %vm3585_vm1, %v3584_v52  ;;  %v3465_v59 = vld [vmem:[%s3721_s24 + $0x38] sm:$0xff]   ;;  %v1011_v60 = vld [vmem:[#allocation3] sm:$0xff] }
 0x153   : > { %1836 = vst [vmem:[#allocation5 + $0x50] sm:$0xff] %v3584_v52  ;;  %1837 = vst [vmem:[#allocation5 + $0x58] sm:$0xff] %v3584_v52  ;;  %v1012_v61 = vld [vmem:[#allocation3 + $0x8] sm:$0xff]  ;;  %v1013_v63 = vld [vmem:[#allocation3 + $0x10] sm:$0xff] }
 0x154   : > { %v1037_v62 = vpack.c.bf16 %v1012_v61, %v1011_v60  ;;  %v1014_v0 = vld [vmem:[#allocation3 + $0x18] sm:$0xff]  ;;  %v1015_v2 = vld [vmem:[#allocation3 + $0x20] sm:$0xff]  ;;  %v1016_v3 = vld [vmem:[#allocation3 + $0x28] sm:$0xff] }
 0x155   : > { %3199 = vmatpush3.bf16.msra.mxu0 %v3459_v53  ;;  %v1038_v1 = vpack.c.bf16 %v1014_v0, %v1013_v63  ;;  %v1039_v4 = vpack.c.bf16 %v1016_v3, %v1015_v2  ;;  %v1017_v5 = vld [vmem:[#allocation3 + $0x30] sm:$0xff]  ;;  %v1018_v6 = vld [vmem:[#allocation3 + $0x38] sm:$0xff]  ;;  %v1019_v8 = vld [vmem:[#allocation3 + $0x40] sm:$0xff] }
 0x156   : > { %3200 = vmatprep.subr.bf16.mxu0 %v3584_v52  ;;  %v1040_v7 = vpack.c.bf16 %v1018_v6, %v1017_v5  ;;  %v1020_v9 = vld [vmem:[#allocation3 + $0x48] sm:$0xff]  ;;  %v3466_v11 = vld [vmem:[%s3731_s12] sm:$0xff]   ;;  %v3875_v13 = vld [vmem:[#allocation4] sm:$0xff] }
 0x157   : > { %v1041_v10 = vpack.c.bf16 %v1020_v9, %v1019_v8  ;;  %v3467_v12 = vld [vmem:[%s3731_s12 + $0x8] sm:$0xff]   ;;  %v3878_v15 = vld [vmem:[%s3746_s28] ss:$0 sm:$0xff]  ;;  %v3880_v16 = vld [vmem:[#allocation4 + $0x8] sm:$0xff] }
 0x158   : > { %v3888_v20 = vld [vmem:[%s4404_s17] ss:$0 sm:$0xff]  ;;  %v3904_v30 = vld [vmem:[#allocation4 + $0x18] sm:$0xff]  ;;  %v3916_v40 = vld [vmem:[#allocation4 + $0x20] sm:$0xff] }
 0x159   : > { %3201 = vmatpush3.bf16.msra.mxu0 %v3460_v54  ;;  %v3896_v26 = vld [vmem:[#allocation4 + $0x10] sm:$0xff]  ;;  %v3922_v43 = vld [vmem:[#allocation4 + $0x28] sm:$0xff]  ;;  %v3470_v63 = vld [vmem:[%s3726_s25 + $0x8] sm:$0xff]  }
 0x15a   : > { %3202 = vmatprep.subr.bf16.mxu0 %v3584_v52  ;;  %v3961_v8 = vld [vmem:[#allocation4 + $0x40] sm:$0xff] }
 0x15b   : > { %v3472_v9 = vld [vmem:[%s3726_s25 + $0x10] sm:$0xff]  }
 0x15d   : > { %3203 = vmatpush3.bf16.msra.mxu0 %v3461_v55  ;;  %v3468_v55 = vld [vmem:[%s3726_s25] sm:$0xff]  }
 0x15e   : > { %3204 = vmatprep.subr.bf16.mxu0 %v3584_v52  ;;  %3233 = vmatpush3.bf16.msra.mxu1 %v3468_v55 }
 0x15f   : > { %3234 = vmatprep.subr.bf16.mxu1 %v3584_v52 }
 0x161   : > { %3205 = vmatpush3.bf16.msra.mxu0 %v3462_v56  ;;  %v3937_v56 = vld [vmem:[#allocation4 + $0x30] sm:$0xff] }
 0x162   : > { %3206 = vmatprep.subr.bf16.mxu0 %v3584_v52  ;;  %3235 = vmatpush3.bf16.msra.mxu1 %v3470_v63 }
 0x163   : > { %3236 = vmatprep.subr.bf16.mxu1 %v3584_v52 }
 0x165   : > { %3207 = vmatpush3.bf16.msra.mxu0 %v3463_v57 }
 0x166   : > { %3208 = vmatprep.subr.bf16.mxu0 %v3584_v52  ;;  %3237 = vmatpush3.bf16.msra.mxu1 %v3472_v9 }
 0x167   : > { %3238 = vmatprep.subr.bf16.mxu1 %v3584_v52 }
 0x169   : > { %3209 = vmatpush3.bf16.msra.mxu0 %v3464_v58 }
 0x16a   : > { %3210 = vmatprep.subr.bf16.mxu0 %v3584_v52 }
 0x16d   : > { %3211 = vmatpush3.bf16.msra.mxu0 %v3465_v59  ;;  %v3943_v59 = vld [vmem:[#allocation4 + $0x38] sm:$0xff] }
 0x16e   : > { %3268 = vmatprep.subr.bf16.mxu0 %v3584_v52 }
 0x170   : > { %3213 = vmatmul.mubr.bf16.vlgmr.msra.gmra.mrb[0].mxu0 %v1037_v62 }
 0x171   : > { %3216 = vmatprep.mubr.msk.bf16.mxu0 %vm3585_vm1, %v3584_v52  ;;  %3269 = vmatpush3.bf16.msra.mxu0 %v3466_v11 }
 0x172   : > { %3270 = vmatprep.subr.bf16.mxu0 %v3584_v52 }
 0x175   : > { %3271 = vmatpush3.bf16.msra.mxu0 %v3467_v12 }
 0x176   : > { %3272 = vmatprep.subr.bf16.mxu0 %v3584_v52 }
 0x178   : > { %3217 = vmatmul.mubr.bf16.gmra.mrb[4].mxu0 %v1038_v1 }
 0x179   : > { %3220 = vmatprep.mubr.msk.bf16.mxu0 %vm3585_vm1, %v3584_v52 }
 0x180   : > { %3221 = vmatmul.mubr.bf16.gmra.mrb[8].mxu0 %v1039_v4 }
 0x181   : > { %3224 = vmatprep.mubr.msk.bf16.mxu0 %vm3585_vm1, %v3584_v52 }
 0x188   : > { %3225 = vmatmul.mubr.bf16.gmra.mrb[12].mxu0 %v1040_v7  ;;  %v3469_v7 = vld [vmem:[%s3731_s12 + $0x10] sm:$0xff]  }
 0x189   : > { %3228 = vmatprep.mubr.msk.bf16.mxu0 %vm3585_vm1, %v3584_v52  ;;  %3273 = vmatpush3.bf16.msra.mxu0 %v3469_v7 }
 0x18a   : > { %3274 = vmatprep.subr.bf16.mxu0 %v3584_v52 }
 0x190   : > { %3229 = vmatmul.mubr.bf16.gmra.mrb[16].mxu0 %v1041_v10 }
 0x191   : > { %3284 = vmatprep.mubr.msk.bf16.mxu0 %vm3585_vm1, %v3584_v52 }
 0x243   : > { %v1124_v14 = vpop.f32.mrb[0].mxu0 }
 0x244   : > { %v1163_v17 = vadd.f32 %v1124_v14, %v3875_v13  ;;  %v3214_v18 = vpop.f32.mrb[1].mxu0  ;;  %v3970_v14 = vld [vmem:[#allocation4 + $0x48] sm:$0xff] }
 0x245   : > { %v1127_v19 = vpop.f32.mrb[2].mxu0 }
 0x246   : > { %v1178_v21 = vadd.f32 %v3878_v15, %v1163_v17  ;;  %v1164_v22 = vadd.f32 %v1127_v19, %v3880_v16  ;;  %v3215_v23 = vpop.f32.mrb[3].mxu0 }
 0x247   : > { %v3474_v23 = vld [vmem:[%s3726_s25 + $0x18] sm:$0xff]  }
 0x248   : > { %v1179_v24 = vadd.f32 %v3878_v15, %v1164_v22  ;;  %v3894_v25 = vadd.f32 %v3888_v20, %v1178_v21  ;;  %v3471_v21 = vld [vmem:[%s3731_s12 + $0x18] sm:$0xff]   ;;  %3239 = vmatpush3.bf16.msra.mxu1 %v3474_v23 }
 0x249   : > { %3275 = vmatpush3.bf16.msra.mxu0 %v3471_v21  ;;  %3240 = vmatprep.subr.bf16.mxu1 %v3584_v52 }
 0x24a   : > { %1207 = vadd.xlane.f32.xlu0 %v3894_v25  ;;  %v1237_v27 = vmul.f32 %v3894_v25, %v3894_v25  ;;  %v3902_v28 = vadd.f32 %v3888_v20, %v1179_v24  ;;  %3276 = vmatprep.subr.bf16.mxu0 %v3584_v52 }
 0x24b   : > { %v1132_v29 = vpop.f32.mrb[4].mxu0 }
 0x24c   : > { %v1165_v31 = vadd.f32 %v1132_v29, %v3896_v26  ;;  %v3218_v32 = vpop.f32.mrb[5].mxu0  ;;  %1247 = vadd.xlane.f32.xlu1 %v1237_v27  ;;  %v1238_v38 = vmul.f32 %v3902_v28, %v3902_v28 }
 0x24d   : > { %v1135_v33 = vpop.f32.mrb[6].mxu0 }
 0x24e   : > { %v1180_v35 = vadd.f32 %v3878_v15, %v1165_v31  ;;  %v1166_v36 = vadd.f32 %v1135_v33, %v3904_v30  ;;  %v3219_v37 = vpop.f32.mrb[7].mxu0  ;;  %1209 = vadd.xlane.f32.xlu0 %v3902_v28  ;;  %v3473_v33 = vld [vmem:[%s3731_s12 + $0x20] sm:$0xff]  }
 0x24f   : > { %3277 = vmatpush3.bf16.msra.mxu0 %v3473_v33 }
 0x250   : > { %v1181_v34 = vadd.f32 %v3878_v15, %v1166_v36  ;;  %1249 = vadd.xlane.f32.xlu1 %v1238_v38  ;;  %v3914_v39 = vadd.f32 %v3888_v20, %v1180_v35  ;;  %v3475_v35 = vld [vmem:[%s3726_s25 + $0x20] sm:$0xff]   ;;  %3278 = vmatprep.subr.bf16.mxu0 %v3584_v52  ;;  %v3476_v38 = vld [vmem:[%s3731_s12 + $0x28] sm:$0xff]  }
 0x251   : > { %3241 = vmatpush3.bf16.msra.mxu1 %v3475_v35 }
 0x252   : > { %1211 = vadd.xlane.f32.xlu0 %v3914_v39  ;;  %v3920_v41 = vadd.f32 %v3888_v20, %v1181_v34  ;;  %v1239_v46 = vmul.f32 %v3914_v39, %v3914_v39  ;;  %3242 = vmatprep.subr.bf16.mxu1 %v3584_v52  ;;  %v3478_v34 = vld [vmem:[%s3731_s12 + $0x30] sm:$0xff]  }
 0x253   : > { %v1140_v42 = vpop.f32.mrb[8].mxu0  ;;  %3279 = vmatpush3.bf16.msra.mxu0 %v3476_v38 }
 0x254   : > { %v1167_v44 = vadd.f32 %v1140_v42, %v3916_v40  ;;  %v3222_v45 = vpop.f32.mrb[9].mxu0  ;;  %1213 = vadd.xlane.f32.xlu1 %v3920_v41  ;;  %v1240_v51 = vmul.f32 %v3920_v41, %v3920_v41  ;;  %3280 = vmatprep.subr.bf16.mxu0 %v3584_v52  ;;  %v3479_v42 = vld [vmem:[%s3726_s25 + $0x30] sm:$0xff]  }
 0x255   : > { %v1143_v47 = vpop.f32.mrb[10].mxu0  ;;  %v3481_v45 = vld [vmem:[%s3726_s25 + $0x38] sm:$0xff]  }
 0x256   : > { %v1182_v48 = vadd.f32 %v3878_v15, %v1167_v44  ;;  %v1168_v49 = vadd.f32 %v1143_v47, %v3922_v43  ;;  %v3223_v50 = vpop.f32.mrb[11].mxu0  ;;  %1251 = vadd.xlane.f32.xlu0 %v1239_v46  ;;  %v3480_v44 = vld [vmem:[%s3731_s12 + $0x38] sm:$0xff]   ;;  %s4118_s12 = smov 0  }
 0x257   : > { %3281 = vmatpush3.bf16.msra.mxu0 %v3478_v34 }
 0x258   : > { %v1183_v53 = vadd.f32 %v3878_v15, %v1168_v49  ;;  %1253 = vadd.xlane.f32.xlu1 %v1240_v51  ;;  %v3934_v54 = vadd.f32 %v3888_v20, %v1182_v48  ;;  %3282 = vmatprep.subr.bf16.mxu0 %v3584_v52 }
 0x25a   : > { %1215 = vadd.xlane.f32.xlu0 %v3934_v54  ;;  %v3941_v57 = vadd.f32 %v3888_v20, %v1183_v53  ;;  %v1241_v62 = vmul.f32 %v3934_v54, %v3934_v54 }
 0x25b   : > { %v1148_v58 = vpop.f32.mrb[12].mxu0  ;;  %3283 = vmatpush3.bf16.msra.mxu0 %v3480_v44 }
 0x25c   : > { %v1169_v60 = vadd.f32 %v1148_v58, %v3937_v56  ;;  %v3226_v61 = vpop.f32.mrb[13].mxu0  ;;  %1217 = vadd.xlane.f32.xlu1 %v3941_v57  ;;  %v1242_v3 = vmul.f32 %v3941_v57, %v3941_v57 }
 0x25d   : > { %v1151_v0 = vpop.f32.mrb[14].mxu0 }
 0x25e   : > { %v1184_v1 = vadd.f32 %v3878_v15, %v1169_v60  ;;  %v1170_v2 = vadd.f32 %v1151_v0, %v3943_v59  ;;  %1255 = vadd.xlane.f32.xlu0 %v1241_v62  ;;  %v3227_v4 = vpop.f32.mrb[15].mxu0 }
 0x260   : > { %v1185_v5 = vadd.f32 %v3878_v15, %v1170_v2  ;;  %1257 = vadd.xlane.f32.xlu1 %v1242_v3  ;;  %v3958_v6 = vadd.f32 %v3888_v20, %v1184_v1 }
 0x262   : > { %1219 = vadd.xlane.f32.xlu0 %v3958_v6  ;;  %v3966_v10 = vadd.f32 %v3888_v20, %v1185_v5  ;;  %v1243_v11 = vmul.f32 %v3958_v6, %v3958_v6 }
 0x263   : > { %v1156_v12 = vpop.f32.mrb[16].mxu0 }
 0x264   : > { %v1171_v17 = vadd.f32 %v1156_v12, %v3961_v8  ;;  %v3230_v18 = vpop.f32.mrb[17].mxu0  ;;  %1221 = vadd.xlane.f32.xlu1 %v3966_v10  ;;  %v1244_v19 = vmul.f32 %v3966_v10, %v3966_v10 }
 0x265   : > { %v1159_v22 = vpop.f32.mrb[18].mxu0 }
 0x266   : > { %v1186_v24 = vadd.f32 %v3878_v15, %v1171_v17  ;;  %v1172_v27 = vadd.f32 %v1159_v22, %v3970_v14  ;;  %1259 = vadd.xlane.f32.xlu0 %v1243_v11  ;;  %v3231_v29 = vpop.f32.mrb[19].mxu0 }
 0x268   : > { %v1187_v31 = vadd.f32 %v3878_v15, %v1172_v27  ;;  %1261 = vadd.xlane.f32.xlu1 %v1244_v19  ;;  %v3985_v32 = vadd.f32 %v3888_v20, %v1186_v24 }
 0x26a   : > { %1223 = vadd.xlane.f32.xlu0 %v3985_v32  ;;  %v3992_v36 = vadd.f32 %v3888_v20, %v1187_v31  ;;  %v1245_v37 = vmul.f32 %v3985_v32, %v3985_v32  ;;  %v3477_v20 = vld [vmem:[%s3726_s25 + $0x28] sm:$0xff]  }
 0x26b   : > { %3243 = vmatpush3.bf16.msra.mxu1 %v3477_v20 }
 0x26c   : > { %1225 = vadd.xlane.f32.xlu1 %v3992_v36  ;;  %v1246_v15 = vmul.f32 %v3992_v36, %v3992_v36  ;;  %3244 = vmatprep.subr.bf16.mxu1 %v3584_v52 }
 0x26e   : > { %1263 = vadd.xlane.f32.xlu0 %v1245_v37 }
 0x26f   : > { %3245 = vmatpush3.bf16.msra.mxu1 %v3479_v42 }
 0x270   : > { %1265 = vadd.xlane.f32.xlu1 %v1246_v15  ;;  %3246 = vmatprep.subr.bf16.mxu1 %v3584_v52 }
 0x273   : > { %3247 = vmatpush3.bf16.msra.mxu1 %v3481_v45 }
 0x2d7   : > { %v1208_v46 = vpop.xlane.xlu0 %1207 }
 0x2d8   : > { %v1227_v47 = vmul.f32 0.03125, %v1208_v46 }
 0x2d9   : > { %v1248_v48 = vpop.xlane.xlu1 %1247 }
 0x2da   : > { %v1277_v49 = vmul.f32 %v1227_v47, %v1227_v47  ;;  %v1267_v50 = vmul.f32 0.03125, %v1248_v48  ;;  %v1307_v35 = vsub.f32 %v3894_v25, %v1227_v47  ;;  %v4029_v25 = vld [vmem:[%s3746_s28 + $0x1] ss:$0 sm:$0xff] }
 0x2db   : > { %v1210_v51 = vpop.xlane.xlu0 %1209 }
 0x2dc   : > { %v1287_v53 = vsub.f32 %v1267_v50, %v1277_v49  ;;  %v1228_v55 = vmul.f32 0.03125, %v1210_v51 }
 0x2dd   : > { %v1250_v58 = vpop.xlane.xlu1 %1249 }
 0x2de   : > { %v1297_v60 = vmax.f32 %v1287_v53, 0.0  ;;  %v1278_v61 = vmul.f32 %v1228_v55, %v1228_v55  ;;  %v1268_v62 = vmul.f32 0.03125, %v1250_v58  ;;  %v1308_v47 = vsub.f32 %v3902_v28, %v1228_v55 }
 0x2df   : > { %v1212_v63 = vpop.xlane.xlu0 %1211 }
 0x2e0   : > { %v1317_v0 = vadd.f32 1e-05, %v1297_v60  ;;  %v1288_v1 = vsub.f32 %v1268_v62, %v1278_v61  ;;  %v4011_v2 = vmul.f32 0.03125, %v1212_v63 }
 0x2e1   : > { %v1214_v3 = vpop.xlane.xlu1 %1213 }
 0x2e2   : > { %3482 = vrsqrt.f32 %v1317_v0  ;;  %v1298_v4 = vmax.f32 %v1288_v1, 0.0  ;;  %v4013_v5 = vmul.f32 0.03125, %v1214_v3  ;;  %v1279_v11 = vmul.f32 %v4011_v2, %v4011_v2 }
 0x2e3   : > { %v1252_v7 = vpop.xlane.xlu0 %1251 }
 0x2e4   : > { %v1318_v9 = vadd.f32 1e-05, %v1298_v4  ;;  %v1269_v12 = vmul.f32 0.03125, %v1252_v7  ;;  %v1280_v18 = vmul.f32 %v4013_v5, %v4013_v5  ;;  %v4038_v4 = vld [vmem:[%s3746_s28 + $0x2] ss:$0 sm:$0xff] }
 0x2e5   : > { %v1254_v17 = vpop.xlane.xlu1 %1253 }
 0x2e6   : > { %3484 = vrsqrt.f32 %v1318_v9  ;;  %v1289_v19 = vsub.f32 %v1269_v12, %v1279_v11  ;;  %v1270_v21 = vmul.f32 0.03125, %v1254_v17  ;;  %v1309_v12 = vsub.f32 %v3914_v39, %v4011_v2 }
 0x2e7   : > { %v1216_v22 = vpop.xlane.xlu0 %1215 }
 0x2e8   : > { %v1299_v23 = vmax.f32 %v1289_v19, 0.0  ;;  %v1290_v24 = vsub.f32 %v1270_v21, %v1280_v18  ;;  %v4019_v27 = vmul.f32 0.03125, %v1216_v22 }
 0x2e9   : > { %v1218_v29 = vpop.xlane.xlu1 %1217 }
 0x2ea   : > { %v1319_v31 = vadd.f32 1e-05, %v1299_v23  ;;  %v1300_v33 = vmax.f32 %v1290_v24, 0.0  ;;  %v4022_v37 = vmul.f32 0.03125, %v1218_v29  ;;  %v1281_v34 = vmul.f32 %v4019_v27, %v4019_v27 }
 0x2eb   : > { %v1256_v15 = vpop.xlane.xlu0 %1255  ;;  %v1310_v29 = vsub.f32 %v3920_v41, %v4013_v5 }
 0x2ec   : > { %v3483_v38 = vpop.eup %3482  ;;  %3486 = vrsqrt.f32 %v1319_v31  ;;  %v1320_v20 = vadd.f32 1e-05, %v1300_v33  ;;  %v1271_v42 = vmul.f32 0.03125, %v1256_v15  ;;  %v1282_v46 = vmul.f32 %v4022_v37, %v4022_v37 }
 0x2ed   : > { %v1258_v44 = vpop.xlane.xlu1 %1257  ;;  %v1337_v45 = vmul.f32 %v3483_v38, %v1307_v35 }
 0x2ee   : > { %3488 = vrsqrt.f32 %v1320_v20  ;;  %v1291_v48 = vsub.f32 %v1271_v42, %v1281_v34  ;;  %v1272_v49 = vmul.f32 0.03125, %v1258_v44 }
 0x2ef   : > { %v1220_v50 = vpop.xlane.xlu0 %1219  ;;  %v1351_v63 = vmul.f32 %v4029_v25, %v1337_v45 }
 0x2f0   : > { %v3485_v51 = vpop.eup %3484  ;;  %v1301_v53 = vmax.f32 %v1291_v48, 0.0  ;;  %v1292_v58 = vsub.f32 %v1272_v49, %v1282_v46  ;;  %v4032_v60 = vmul.f32 0.03125, %v1220_v50  ;;  %v1311_v50 = vsub.f32 %v3934_v54, %v4019_v27 }
 0x2f1   : > { %v1222_v61 = vpop.xlane.xlu1 %1221  ;;  %v1338_v62 = vmul.f32 %v3485_v51, %v1308_v47  ;;  %v1365_v19 = vadd.f32 %v4038_v4, %v1351_v63 }
 0x2f2   : > { %v1321_v0 = vadd.f32 1e-05, %v1301_v53  ;;  %v1302_v1 = vmax.f32 %v1292_v58, 0.0  ;;  %v1283_v3 = vmul.f32 %v4032_v60, %v4032_v60  ;;  %v4040_v7 = vmul.f32 0.03125, %v1222_v61 }
 0x2f3   : > { %v1260_v28 = vpop.xlane.xlu0 %1259  ;;  %v1352_v55 = vmul.f32 %v4029_v25, %v1338_v62 }
 0x2f4   : > { %3490 = vrsqrt.f32 %v1321_v0  ;;  %v1322_v9 = vadd.f32 1e-05, %v1302_v1  ;;  %v1273_v11 = vmul.f32 0.03125, %v1260_v28  ;;  %v1284_v17 = vmul.f32 %v4040_v7, %v4040_v7 }
 0x2f5   : > { %v1262_v18 = vpop.xlane.xlu1 %1261  ;;  %v1366_v21 = vadd.f32 %v4038_v4, %v1352_v55  ;;  %v1312_v1 = vsub.f32 %v3941_v57, %v4022_v37 }
 0x2f6   : > { %v3487_v22 = vpop.eup %3486  ;;  %3492 = vrsqrt.f32 %v1322_v9  ;;  %v1293_v23 = vsub.f32 %v1273_v11, %v1283_v3  ;;  %v1274_v24 = vmul.f32 0.03125, %v1262_v18  ;;  %v1313_v18 = vsub.f32 %v3958_v6, %v4032_v60 }
 0x2f7   : > { %v1224_v31 = vpop.xlane.xlu0 %1223  ;;  %v1391_v33 = vpack.c.bf16 %v1366_v21, %v1365_v19  ;;  %v1339_v35 = vmul.f32 %v3487_v22, %v1309_v12 }
 0x2f8   : > { %v3489_v15 = vpop.eup %3488  ;;  %v1303_v39 = vmax.f32 %v1293_v23, 0.0  ;;  %v1294_v2 = vsub.f32 %v1274_v24, %v1284_v17  ;;  %v4051_v38 = vmul.f32 0.03125, %v1224_v31  ;;  %v1314_v23 = vsub.f32 %v3966_v10, %v4040_v7 }
 0x2f9   : > { %3249 = vmatmul.mubr.bf16.vlgmr.msra.gmra.mrb[0].mxu1 %v1391_v33  ;;  %3285 = vmatmul.mubr.bf16.vlgmr.msra.gmra.mrb[20].mxu0 %v1391_v33  ;;  %v1226_v20 = vpop.xlane.xlu1 %1225  ;;  %v1340_v34 = vmul.f32 %v3489_v15, %v1310_v29  ;;  %v1353_v42 = vmul.f32 %v4029_v25, %v1339_v35 }
 0x2fa   : > { %v1323_v44 = vadd.f32 1e-05, %v1303_v39  ;;  %v1304_v45 = vmax.f32 %v1294_v2, 0.0  ;;  %v1285_v46 = vmul.f32 %v4051_v38, %v4051_v38  ;;  %3252 = vmatprep.mubr.msk.bf16.mxu1 %vm3585_vm1, %v3584_v52  ;;  %3288 = vmatprep.mubr.msk.bf16.mxu0 %vm3585_vm1, %v3584_v52  ;;  %v1236_v41 = vmul.f32 0.03125, %v1226_v20 }
 0x2fb   : > { %v1264_v5 = vpop.xlane.xlu0 %1263  ;;  %v1354_v48 = vmul.f32 %v4029_v25, %v1340_v34  ;;  %v1367_v58 = vadd.f32 %v4038_v4, %v1353_v42  ;;  %v1315_v60 = vsub.f32 %v3985_v32, %v4051_v38 }
 0x2fc   : > { %3494 = vrsqrt.f32 %v1323_v44  ;;  %v1324_v49 = vadd.f32 1e-05, %v1304_v45  ;;  %v1275_v47 = vmul.f32 0.03125, %v1264_v5  ;;  %v1286_v51 = vmul.f32 %v1236_v41, %v1236_v41  ;;  %v4105_v5 = vld [vmem:[%s3741_s26 + $0x10] sm:$0xff] }
 0x2fd   : > { %v1266_v53 = vpop.xlane.xlu1 %1265  ;;  %v1368_v61 = vadd.f32 %v4038_v4, %v1354_v48  ;;  %v1316_v39 = vsub.f32 %v3992_v36, %v1236_v41  ;;  %v4102_v41 = vld [vmem:[%s3741_s26 + $0x8] sm:$0xff]  ;;  %v4108_v48 = vld [vmem:[%s3741_s26 + $0x18] sm:$0x7f] }
 0x2fe   : > { %v3491_v62 = vpop.eup %3490  ;;  %3496 = vrsqrt.f32 %v1324_v49  ;;  %v1295_v63 = vsub.f32 %v1275_v47, %v1285_v46  ;;  %v1276_v0 = vmul.f32 0.03125, %v1266_v53  ;;  %v4099_v46 = vld [vmem:[%s3741_s26] sm:$0xff] }
 0x2ff   : > { %v1392_v3 = vpack.c.bf16 %v1368_v61, %v1367_v58  ;;  %v1341_v28 = vmul.f32 %v3491_v62, %v1311_v50  ;;  %v4111_v49 = vld [vmem:[%s3751_s15 + $0x2] ss:$0 sm:$0xff]  ;;  %v4114_v47 = vld [vmem:[%s3751_s15 + $0x3] ss:$0 sm:$0xff] }
 0x300   : > { %v3493_v55 = vpop.eup %3492  ;;  %v1305_v9 = vmax.f32 %v1295_v63, 0.0  ;;  %v1296_v11 = vsub.f32 %v1276_v0, %v1286_v51 }
 0x301   : > { %3253 = vmatmul.mubr.bf16.gmra.mrb[4].mxu1 %v1392_v3  ;;  %3289 = vmatmul.mubr.bf16.gmra.mrb[24].mxu0 %v1392_v3  ;;  %v1342_v54 = vmul.f32 %v3493_v55, %v1312_v1  ;;  %v1355_v27 = vmul.f32 %v4029_v25, %v1341_v28 }
 0x302   : > { %v1325_v12 = vadd.f32 1e-05, %v1305_v9  ;;  %v1306_v17 = vmax.f32 %v1296_v11, 0.0  ;;  %3256 = vmatprep.mubr.msk.bf16.mxu1 %vm3585_vm1, %v3584_v52  ;;  %3292 = vmatprep.mubr.msk.bf16.mxu0 %vm3585_vm1, %v3584_v52 }
 0x303   : > { %v1356_v57 = vmul.f32 %v4029_v25, %v1342_v54  ;;  %v1369_v19 = vadd.f32 %v4038_v4, %v1355_v27  ;;  %v2940_v54 = vld [vmem:[%s3751_s15 + $0x1] ss:$0 sm:$0xff] }
 0x304   : > { %3498 = vrsqrt.f32 %v1325_v12  ;;  %v1326_v37 = vadd.f32 1e-05, %v1306_v17 }
 0x305   : > { %v1370_v21 = vadd.f32 %v4038_v4, %v1356_v57 }
 0x306   : > { %v3495_v22 = vpop.eup %3494  ;;  %3500 = vrsqrt.f32 %v1326_v37 }
 0x307   : > { %v1393_v24 = vpack.c.bf16 %v1370_v21, %v1369_v19  ;;  %v1343_v29 = vmul.f32 %v3495_v22, %v1313_v18 }
 0x308   : > { %v3497_v31 = vpop.eup %3496 }
 0x309   : > { %3257 = vmatmul.mubr.bf16.gmra.mrb[8].mxu1 %v1393_v24  ;;  %3293 = vmatmul.mubr.bf16.gmra.mrb[28].mxu0 %v1393_v24  ;;  %v1344_v33 = vmul.f32 %v3497_v31, %v1314_v23  ;;  %v1357_v35 = vmul.f32 %v4029_v25, %v1343_v29 }
 0x30a   : > { %3260 = vmatprep.mubr.msk.bf16.mxu1 %vm3585_vm1, %v3584_v52  ;;  %3296 = vmatprep.mubr.msk.bf16.mxu0 %vm3585_vm1, %v3584_v52 }
 0x30b   : > { %v1358_v6 = vmul.f32 %v4029_v25, %v1344_v33  ;;  %v1371_v10 = vadd.f32 %v4038_v4, %v1357_v35 }
 0x30d   : > { %v1372_v7 = vadd.f32 %v4038_v4, %v1358_v6 }
 0x30e   : > { %v3499_v15 = vpop.eup %3498 }
 0x30f   : > { %v1394_v2 = vpack.c.bf16 %v1372_v7, %v1371_v10  ;;  %v1345_v20 = vmul.f32 %v3499_v15, %v1315_v60 }
 0x310   : > { %v3501_v34 = vpop.eup %3500 }
 0x311   : > { %3261 = vmatmul.mubr.bf16.gmra.mrb[12].mxu1 %v1394_v2  ;;  %3297 = vmatmul.mubr.bf16.gmra.mrb[32].mxu0 %v1394_v2  ;;  %v1346_v42 = vmul.f32 %v3501_v34, %v1316_v39  ;;  %v1359_v32 = vmul.f32 %v4029_v25, %v1345_v20 }
 0x312   : > { %3264 = vmatprep.mubr.msk.bf16.mxu1 %vm3585_vm1, %v3584_v52  ;;  %3300 = vmatprep.mubr.msk.bf16.mxu0 %vm3585_vm1, %v3584_v52 }
 0x313   : > { %v1360_v36 = vmul.f32 %v4029_v25, %v1346_v42  ;;  %v1373_v38 = vadd.f32 %v4038_v4, %v1359_v32 }
 0x315   : > { %v1374_v44 = vadd.f32 %v4038_v4, %v1360_v36 }
 0x317   : > { %v1395_v45 = vpack.c.bf16 %v1374_v44, %v1373_v38 }
 0x319   : > { %3265 = vmatmul.mubr.bf16.gmra.mrb[16].mxu1 %v1395_v45  ;;  %3301 = vmatmul.mubr.bf16.gmra.mrb[36].mxu0 %v1395_v45 }
 0x3cc   : > { %v1483_v25 = vpop.f32.mrb[0].mxu1  ;;  %v1625_v50 = vpop.f32.mrb[20].mxu0 }
 0x3cd   : > { %v3250_v51 = vpop.f32.mrb[1].mxu1  ;;  %v3286_v4 = vpop.f32.mrb[21].mxu0 }
 0x3ce   : > { %v1486_v53 = vpop.f32.mrb[2].mxu1  ;;  %v1628_v58 = vpop.f32.mrb[22].mxu0  ;;  %v2931_v51 = vld [vmem:[%s3751_s15] ss:$0 sm:$0xff] }
 0x3cf   : > { %v3251_v61 = vpop.f32.mrb[3].mxu1  ;;  %v3287_v62 = vpop.f32.mrb[23].mxu0 }
 0x3d4   : > { %v1491_v63 = vpop.f32.mrb[4].mxu1  ;;  %v1633_v0 = vpop.f32.mrb[24].mxu0 }
 0x3d5   : > { %v3254_v1 = vpop.f32.mrb[5].mxu1  ;;  %v3290_v3 = vpop.f32.mrb[25].mxu0 }
 0x3d6   : > { %v1494_v28 = vpop.f32.mrb[6].mxu1  ;;  %v1636_v55 = vpop.f32.mrb[26].mxu0 }
 0x3d7   : > { %v3255_v9 = vpop.f32.mrb[7].mxu1  ;;  %v3291_v11 = vpop.f32.mrb[27].mxu0 }
 0x3dc   : > { %v1499_v27 = vpop.f32.mrb[8].mxu1  ;;  %v1641_v12 = vpop.f32.mrb[28].mxu0 }
 0x3dd   : > { %v1642_v17 = vadd.f32 %v2940_v54, %v1641_v12  ;;  %v3258_v57 = vpop.f32.mrb[9].mxu1  ;;  %v3294_v37 = vpop.f32.mrb[29].mxu0  ;;  %v1500_v53 = vadd.f32 %v2931_v51, %v1499_v27 }
 0x3de   : > { %v1502_v18 = vpop.f32.mrb[10].mxu1  ;;  %v1644_v19 = vpop.f32.mrb[30].mxu0 }
 0x3df   : > { %v2953_v21 = vmul.f32 -1.442695, %v1642_v17  ;;  %v1645_v22 = vadd.f32 %v2940_v54, %v1644_v19  ;;  %v3259_v23 = vpop.f32.mrb[11].mxu1  ;;  %v3295_v24 = vpop.f32.mrb[31].mxu0  ;;  %v1503_v63 = vadd.f32 %v2931_v51, %v1502_v18 }
 0x3e1   : > { %3502 = vpow2.f32 %v2953_v21  ;;  %v2954_v29 = vmul.f32 -1.442695, %v1645_v22 }
 0x3e3   : > { %3504 = vpow2.f32 %v2954_v29 }
 0x3e4   : > { %v1507_v31 = vpop.f32.mrb[12].mxu1  ;;  %v1649_v33 = vpop.f32.mrb[32].mxu0 }
 0x3e5   : > { %v3262_v35 = vpop.f32.mrb[13].mxu1  ;;  %v3298_v6 = vpop.f32.mrb[33].mxu0 }
 0x3e6   : > { %v1510_v60 = vpop.f32.mrb[14].mxu1  ;;  %v1652_v10 = vpop.f32.mrb[34].mxu0 }
 0x3e7   : > { %v3263_v7 = vpop.f32.mrb[15].mxu1  ;;  %v3299_v15 = vpop.f32.mrb[35].mxu0 }
 0x3eb   : > { %v3503_v39 = vpop.eup %3502 }
 0x3ec   : > { %v1698_v2 = vadd.f32 1.0, %v3503_v39  ;;  %v1515_v20 = vpop.f32.mrb[16].mxu1  ;;  %v1657_v34 = vpop.f32.mrb[36].mxu0 }
 0x3ed   : > { %v3505_v42 = vpop.eup %3504  ;;  %v3266_v32 = vpop.f32.mrb[17].mxu1 }
 0x3ee   : > { %v3302_v36 = vpop.f32.mrb[37].mxu0  ;;  %3506 = vrcp.f32 %v1698_v2  ;;  %v1699_v38 = vadd.f32 1.0, %v3505_v42  ;;  %v1518_v44 = vpop.f32.mrb[18].mxu1 }
 0x3ef   : > { %v1660_v45 = vpop.f32.mrb[38].mxu0  ;;  %v3267_v25 = vpop.f32.mrb[19].mxu1 }
 0x3f0   : > { %v3303_v50 = vpop.f32.mrb[39].mxu0  ;;  %3508 = vrcp.f32 %v1699_v38 }
 0x3f8   : > { %v3507_v4 = vpop.eup %3506 }
 0x3f9   : > { %v1728_v58 = vmul.f32 %v3507_v4, %v1642_v17 }
 0x3fa   : > { %v3509_v61 = vpop.eup %3508 }
 0x3fb   : > { %v1738_v62 = vmul.f32 %v1728_v58, %v1500_v53  ;;  %v1729_v0 = vmul.f32 %v3509_v61, %v1645_v22 }
 0x3fd   : > { %1832 = vst [vmem:[#allocation5 + $0x30] sm:$0xff] %v1738_v62  ;;  %v1739_v1 = vmul.f32 %v1729_v0, %v1503_v63 }
 0x3ff   : > { %1833 = vst [vmem:[#allocation5 + $0x38] sm:$0xff] %v1739_v1 }
 0x400 LB: >> { %v1855_v3 = vlaneseq  ;;  %s2959_s25 = sshll.u32 %s3580_s12, 4  ;;  %s1849_s12 = sadd.s32 1, %s3580_s12   ;;  %s3580_s12 = sphi %s4118_s12, %s1849_s12  }
 0x401   : >> { %s4126_s29 = scalar_lea.vmem [#allocation5], %s2959_s25  ;;  %s2237_s26 = scalar_lea.vmem [#allocation6], %s2959_s25 }
 0x402   : >> { %v1856_v28 = vshrl.u32 %v1855_v3, 7  ;;  %p1846_p9 = scmp.ge.s32.totalorder %s1849_s12, 5  }
 0x403   : > { %3304 = vmatprep.subr.bf16.mxu1 (%p1846_p9), %v3584_v52  ;;  %3320 = vmatprep.mubr.msk.bf16.mxu1 (%p1846_p9), %vm3585_vm1, %v3584_v52  ;;  %p3064_p10 = scmp.ne.s32.totalorder (%p1846_p9), %s3560_s21, 1 }
 0x404   : >> { %v4129_v9 = vsub.s32 0, %v1856_v28  ;;  %v4131_v11 = vsub.s32 1, %v1856_v28  ;;  %v4133_v54 = vsub.s32 2, %v1856_v28  ;;  %v4138_v57 = vsub.s32 3, %v1856_v28 }
 0x405   : >> { %v4140_v37 = vsub.s32 4, %v1856_v28  ;;  %v4142_v18 = vsub.s32 5, %v1856_v28  ;;  %v4162_v6 = vsub.s32 6, %v1856_v28  ;;  %v4169_v32 = vsub.s32 7, %v1856_v28 }
 0x406   : >> { %v2961_v55 = vld [vmem:[%s4126_s29 + $0x1] sm:$0xff]  ;;  %v2962_v27 = vld [vmem:[%s4126_s29 + $0x9] sm:$0xff]  ;;  %v1858_v19 = vrot.slane %v4099_v46, %v4129_v9  ;;  %v1868_v21 = vrot.slane %v4099_v46, %v4131_v11  ;;  %v1880_v24 = vrot.slane %v4099_v46, %v4133_v54  ;;  %v1892_v33 = vrot.slane %v4099_v46, %v4138_v57 }
 0x407   : >> { %v2964_v12 = vld [vmem:[%s4126_s29 + $0x2] sm:$0xff]  ;;  %v2965_v17 = vld [vmem:[%s4126_s29 + $0xa] sm:$0xff]  ;;  %v1904_v35 = vrot.slane %v4099_v46, %v4140_v37  ;;  %v1916_v42 = vrot.slane %v4099_v46, %v4142_v18  ;;  %v1928_v61 = vrot.slane %v4099_v46, %v4162_v6 }
 0x408   : >> { %v2967_v22 = vld [vmem:[%s4126_s29 + $0x3] sm:$0xff]  ;;  %v4150_v23 = vld [vmem:[%s4126_s29 + $0xb] sm:$0xff]  ;;  %v1859_v60 = vmul.f32 %v2961_v55, %v1858_v19  ;;  %v1860_v10 = vmul.f32 %v2962_v27, %v1858_v19  ;;  %v1869_v7 = vmul.f32 %v2964_v12, %v1868_v21  ;;  %v1870_v15 = vmul.f32 %v2965_v17, %v1868_v21 }
 0x409   : >> { %v2970_v29 = vld [vmem:[%s4126_s29 + $0x4] sm:$0xff]  ;;  %v4156_v31 = vld [vmem:[%s4126_s29 + $0xc] sm:$0xff]  ;;  %v1881_v2 = vmul.f32 %v2967_v22, %v1880_v24  ;;  %v1882_v20 = vmul.f32 %v4150_v23, %v1880_v24  ;;  %v1940_v55 = vrot.slane %v4099_v46, %v4169_v32  ;;  %v1952_v21 = vrot.slane %v4102_v41, %v4129_v9  ;;  %v3513_v46 = vld [vmem:[%s3736_s18 + $0x18] sm:$0xff] (%p1846_p9)  }
 0x40a   : >> { %v2973_v39 = vld [vmem:[%s4126_s29 + $0x5] sm:$0xff]  ;;  %v2974_v34 = vld [vmem:[%s4126_s29 + $0xd] sm:$0xff]  ;;  %v1871_v36 = vadd.f32 %v1869_v7, %v1859_v60  ;;  %v1872_v38 = vadd.f32 %v1870_v15, %v1860_v10  ;;  %v1893_v44 = vmul.f32 %v2970_v29, %v1892_v33  ;;  %v1894_v45 = vmul.f32 %v4156_v31, %v1892_v33 }
 0x40b   : >> { %v2976_v25 = vld [vmem:[%s4126_s29 + $0x6] sm:$0xff]  ;;  %v1905_v50 = vmul.f32 %v2973_v39, %v1904_v35  ;;  %v2977_v51 = vld [vmem:[%s4126_s29 + $0xe] sm:$0xff]  ;;  %v1906_v58 = vmul.f32 %v2974_v34, %v1904_v35  ;;  %v1964_v60 = vrot.slane %v4102_v41, %v4131_v11 }
 0x40c   : >> { %v1883_v4 = vadd.f32 %v1881_v2, %v1871_v36  ;;  %v1884_v53 = vadd.f32 %v1882_v20, %v1872_v38  ;;  %v1917_v62 = vmul.f32 %v2976_v25, %v1916_v42  ;;  %v2979_v63 = vld [vmem:[%s4126_s29 + $0x7] sm:$0xff]  ;;  %v2980_v0 = vld [vmem:[%s4126_s29 + $0xf] sm:$0xff]  ;;  %v1918_v28 = vmul.f32 %v2977_v51, %v1916_v42 }
 0x40d   : >> { %v2982_v12 = vld [vmem:[%s4126_s29 + $0x8] sm:$0xff]  ;;  %v2983_v19 = vld [vmem:[%s4126_s29 + $0x10] sm:$0xff]  ;;  %v1929_v29 = vmul.f32 %v2979_v63, %v1928_v61  ;;  %v1930_v33 = vmul.f32 %v2980_v0, %v1928_v61  ;;  %v1953_v2 = vmul.f32 %v2962_v27, %v1952_v21  ;;  %v2000_v27 = vrot.slane %v4102_v41, %v4140_v37 }
 0x40e   : >> { %v1895_v1 = vadd.f32 %v1893_v44, %v1883_v4  ;;  %v1896_v3 = vadd.f32 %v1894_v45, %v1884_v53  ;;  %v2986_v35 = vld [vmem:[%s4126_s29 + $0x11] sm:$0xff]  ;;  %v1941_v15 = vmul.f32 %v2982_v12, %v1940_v55  ;;  %v1942_v39 = vmul.f32 %v2983_v19, %v1940_v55 }
 0x40f   : >> { %v2989_v20 = vld [vmem:[%s4126_s29 + $0x12] sm:$0xff]  ;;  %v1954_v38 = vmul.f32 %v2986_v35, %v1952_v21  ;;  %v1976_v44 = vrot.slane %v4102_v41, %v4133_v54  ;;  %v1965_v45 = vmul.f32 %v2965_v17, %v1964_v60  ;;  %v2012_v17 = vrot.slane %v4102_v41, %v4142_v18 }
 0x410   : >> { %v1907_v22 = vadd.f32 %v1905_v50, %v1895_v1  ;;  %v1908_v24 = vadd.f32 %v1906_v58, %v1896_v3  ;;  %v2992_v25 = vld [vmem:[%s4126_s29 + $0x13] sm:$0xff]  ;;  %v1966_v53 = vmul.f32 %v2989_v20, %v1964_v60  ;;  %v1988_v58 = vrot.slane %v4102_v41, %v4138_v57 }
 0x411   : >> { %v2995_v61 = vld [vmem:[%s4126_s29 + $0x14] sm:$0xff]  ;;  %v1977_v1 = vmul.f32 %v4150_v23, %v1976_v44  ;;  %v1978_v3 = vmul.f32 %v2992_v25, %v1976_v44  ;;  %v2024_v23 = vrot.slane %v4102_v41, %v4162_v6 }
 0x412   : >> { %v1919_v10 = vadd.f32 %v1917_v62, %v1907_v22  ;;  %v1920_v7 = vadd.f32 %v1918_v28, %v1908_v24  ;;  %v2998_v28 = vld [vmem:[%s4126_s29 + $0x15] sm:$0xff]  ;;  %v1989_v21 = vmul.f32 %v4156_v31, %v1988_v58  ;;  %v1990_v22 = vmul.f32 %v2995_v61, %v1988_v58 }
 0x413   : >> { %v2001_v24 = vmul.f32 %v2974_v34, %v2000_v27  ;;  %v3007_v31 = vld [vmem:[%s4126_s29 + $0x18] sm:$0xff]  ;;  %v2048_v34 = vrot.slane %v4105_v5, %v4129_v9 }
 0x414   : >> { %v1931_v42 = vadd.f32 %v1929_v29, %v1919_v10  ;;  %v1932_v36 = vadd.f32 %v1930_v33, %v1920_v7  ;;  %v3001_v29 = vld [vmem:[%s4126_s29 + $0x16] sm:$0xff]  ;;  %v2002_v10 = vmul.f32 %v2998_v28, %v2000_v27  ;;  %v2013_v7 = vmul.f32 %v2977_v51, %v2012_v17 }
 0x415   : >> { %v2060_v51 = vrot.slane %v4105_v5, %v4131_v11 }
 0x416   : >> { %v1943_v50 = vadd.f32 %v1941_v15, %v1931_v42  ;;  %v1944_v4 = vadd.f32 %v1942_v39, %v1932_v36  ;;  %v3004_v15 = vld [vmem:[%s4126_s29 + $0x17] sm:$0xff]  ;;  %v2014_v42 = vmul.f32 %v3001_v29, %v2012_v17  ;;  %v2036_v36 = vrot.slane %v4102_v41, %v4169_v32  ;;  %v3514_v41 = vld [vmem:[%s3736_s18 + $0x20] sm:$0xff] (%p1846_p9)  }
 0x418   : >> { %v1955_v62 = vadd.f32 %v1953_v2, %v1943_v50  ;;  %v1956_v63 = vadd.f32 %v1954_v38, %v1944_v4  ;;  %v2026_v50 = vmul.f32 %v3004_v15, %v2024_v23  ;;  %v3010_v4 = vld [vmem:[%s4126_s29 + $0x19] sm:$0xff]  ;;  %v2037_v27 = vmul.f32 %v2983_v19, %v2036_v36 }
 0x419   : >> { %v3019_v19 = vld [vmem:[%s4126_s29 + $0x1c] sm:$0xff] }
 0x41a   : >> { %v1967_v55 = vadd.f32 %v1965_v45, %v1955_v62  ;;  %v1968_v12 = vadd.f32 %v1966_v53, %v1956_v63  ;;  %v2025_v45 = vmul.f32 %v2980_v0, %v2024_v23  ;;  %v2038_v62 = vmul.f32 %v3007_v31, %v2036_v36 }
 0x41b   : >> { %v2049_v63 = vmul.f32 %v2986_v35, %v2048_v34  ;;  %v2061_v0 = vmul.f32 %v2989_v20, %v2060_v51  ;;  %v2096_v35 = vrot.slane %v4105_v5, %v4140_v37  ;;  %v2108_v20 = vrot.slane %v4105_v5, %v4142_v18 }
 0x41c   : >> { %v1979_v33 = vadd.f32 %v1977_v1, %v1967_v55  ;;  %v1980_v60 = vadd.f32 %v1978_v3, %v1968_v12  ;;  %v3013_v1 = vld [vmem:[%s4126_s29 + $0x1a] sm:$0xff]  ;;  %v2050_v55 = vmul.f32 %v3010_v4, %v2048_v34  ;;  %v2072_v12 = vrot.slane %v4105_v5, %v4133_v54 }
 0x41e   : >> { %v1991_v39 = vadd.f32 %v1989_v21, %v1979_v33  ;;  %v1992_v2 = vadd.f32 %v1990_v22, %v1980_v60  ;;  %v3016_v21 = vld [vmem:[%s4126_s29 + $0x1b] sm:$0xff]  ;;  %v2062_v33 = vmul.f32 %v3013_v1, %v2060_v51  ;;  %v2084_v60 = vrot.slane %v4105_v5, %v4138_v57 }
 0x420   : >> { %v2003_v38 = vadd.f32 %v2001_v24, %v1991_v39  ;;  %v2004_v44 = vadd.f32 %v2002_v10, %v1992_v2  ;;  %v2074_v39 = vmul.f32 %v3016_v21, %v2072_v12  ;;  %v3022_v2 = vld [vmem:[%s4126_s29 + $0x1d] sm:$0xff]  ;;  %v2085_v34 = vmul.f32 %v2995_v61, %v2084_v60 }
 0x421   : >> { %v3031_v61 = vld [vmem:[%s4126_s29 + $0x20] sm:$0xff] }
 0x422   : >> { %v2015_v53 = vadd.f32 %v2013_v7, %v2003_v38  ;;  %v2016_v58 = vadd.f32 %v2014_v42, %v2004_v44  ;;  %v2073_v7 = vmul.f32 %v2992_v25, %v2072_v12  ;;  %v2086_v38 = vmul.f32 %v3019_v19, %v2084_v60 }
 0x423   : >> { %v2097_v44 = vmul.f32 %v2998_v28, %v2096_v35  ;;  %v2109_v25 = vmul.f32 %v3001_v29, %v2108_v20  ;;  %v2144_v28 = vrot.slane %v4108_v48, %v4129_v9  ;;  %v2156_v29 = vrot.slane %v4108_v48, %v4131_v11 }
 0x424   : >> { %v2027_v3 = vadd.f32 %v2025_v45, %v2015_v53  ;;  %v2028_v17 = vadd.f32 %v2026_v50, %v2016_v58  ;;  %v3025_v45 = vld [vmem:[%s4126_s29 + $0x1e] sm:$0xff]  ;;  %v2098_v53 = vmul.f32 %v3022_v2, %v2096_v35  ;;  %v2120_v58 = vrot.slane %v4105_v5, %v4162_v6 }
 0x426   : >> { %v2039_v22 = vadd.f32 %v2037_v27, %v2027_v3  ;;  %v2040_v24 = vadd.f32 %v2038_v62, %v2028_v17  ;;  %v3028_v27 = vld [vmem:[%s4126_s29 + $0x1f] sm:$0xff]  ;;  %v2110_v3 = vmul.f32 %v3025_v45, %v2108_v20  ;;  %v2132_v17 = vrot.slane %v4105_v5, %v4169_v32  ;;  %v3515_v5 = vld [vmem:[%s3736_s18 + $0x28] sm:$0xff] (%p1846_p9)  }
 0x427   : >> { %v3037_v32 = vld [vmem:[%s4126_s29 + $0x22] sm:$0xff]  ;;  %v2168_v20 = vrot.slane %v4108_v48, %v4133_v54  ;;  %v2204_v54 = vrot.slane %v4108_v48, %v4142_v18 }
 0x428   : >> { %v2051_v10 = vadd.f32 %v2049_v63, %v2039_v22  ;;  %v2052_v23 = vadd.f32 %v2050_v55, %v2040_v24  ;;  %v2122_v22 = vmul.f32 %v3028_v27, %v2120_v58  ;;  %v3034_v24 = vld [vmem:[%s4126_s29 + $0x21] sm:$0xff]  ;;  %v2133_v35 = vmul.f32 %v3007_v31, %v2132_v17 }
 0x429   : >> { %v2146_v9 = vmul.f32 %v3034_v24, %v2144_v28  ;;  %v2158_v11 = vmul.f32 %v3037_v32, %v2156_v29  ;;  %v3043_v31 = vld [vmem:[%s4126_s29 + $0x24] sm:$0xff] }
 0x42a   : >> { %v2063_v42 = vadd.f32 %v2061_v0, %v2051_v10  ;;  %v2064_v36 = vadd.f32 %v2062_v33, %v2052_v23  ;;  %v2121_v0 = vmul.f32 %v3004_v15, %v2120_v58  ;;  %v2134_v10 = vmul.f32 %v3031_v61, %v2132_v17  ;;  %v3046_v58 = vld [vmem:[%s4126_s29 + $0x25] sm:$0xff] }
 0x42b   : >> { %v2145_v23 = vmul.f32 %v3010_v4, %v2144_v28  ;;  %v2157_v15 = vmul.f32 %v3013_v1, %v2156_v29  ;;  %v2192_v4 = vrot.slane %v4108_v48, %v4140_v37  ;;  %v3049_v17 = vld [vmem:[%s4126_s29 + $0x26] sm:$0xff]  ;;  %v2216_v37 = vrot.slane %v4108_v48, %v4162_v6 }
 0x42c   : >> { %v2075_v50 = vadd.f32 %v2073_v7, %v2063_v42  ;;  %v2076_v51 = vadd.f32 %v2074_v39, %v2064_v36  ;;  %v3040_v42 = vld [vmem:[%s4126_s29 + $0x23] sm:$0xff] }
 0x42d   : >> { %v2194_v28 = vmul.f32 %v3046_v58, %v2192_v4  ;;  %v2217_v29 = vmul.f32 %v3028_v27, %v2216_v37  ;;  %v3510_v27 = vld [vmem:[%s3736_s18] sm:$0xff] (%p1846_p9)  }
 0x42e   : >> { %v2087_v62 = vadd.f32 %v2085_v34, %v2075_v50  ;;  %v2088_v63 = vadd.f32 %v2086_v38, %v2076_v51  ;;  %v2180_v38 = vrot.slane %v4108_v48, %v4138_v57  ;;  %v2169_v51 = vmul.f32 %v3016_v21, %v2168_v20  ;;  %3305 = vmatpush3.bf16.msra.mxu1 (%p1846_p9), %v3510_v27  ;;  %v3516_v48 = vld [vmem:[%s3736_s18 + $0x30] sm:$0xff] (%p1846_p9)  }
 0x42f   : > { %3306 = vmatprep.subr.bf16.mxu1 (%p1846_p9), %v3584_v52 }
 0x430   : >> { %v2099_v55 = vadd.f32 %v2097_v44, %v2087_v62  ;;  %v2100_v12 = vadd.f32 %v2098_v53, %v2088_v63  ;;  %v2170_v53 = vmul.f32 %v3040_v42, %v2168_v20  ;;  %v2181_v62 = vmul.f32 %v3019_v19, %v2180_v38 }
 0x431   : >> { %v2182_v63 = vmul.f32 %v3043_v31, %v2180_v38 }
 0x432   : >> { %v2111_v33 = vadd.f32 %v2109_v25, %v2099_v55  ;;  %v2112_v60 = vadd.f32 %v2110_v3, %v2100_v12  ;;  %v2193_v3 = vmul.f32 %v3022_v2, %v2192_v4  ;;  %v3052_v55 = vld [vmem:[%s4126_s29 + $0x27] sm:$0xff] }
 0x434   : >> { %v2123_v7 = vadd.f32 %v2121_v0, %v2111_v33  ;;  %v2124_v39 = vadd.f32 %v2122_v22, %v2112_v60  ;;  %v2205_v0 = vmul.f32 %v3025_v45, %v2204_v54  ;;  %v2206_v22 = vmul.f32 %v3049_v17, %v2204_v54  ;;  %v3055_v54 = vld [vmem:[%s3746_s28 + $0x3] ss:$0 sm:$0xff] (%p1846_p9) }
 0x435   : >> { %v2218_v33 = vmul.f32 %v3052_v55, %v2216_v37 }
 0x436   : >> { %v2135_v36 = vadd.f32 %v2133_v35, %v2123_v7  ;;  %v2136_v34 = vadd.f32 %v2134_v10, %v2124_v39  ;;  %v3511_v39 = vld [vmem:[%s3736_s18 + $0x8] sm:$0xff] (%p1846_p9)  }
 0x437   : > { %3307 = vmatpush3.bf16.msra.mxu1 (%p1846_p9), %v3511_v39 }
 0x438   : >> { %v2147_v44 = vadd.f32 %v2145_v23, %v2135_v36  ;;  %v2148_v50 = vadd.f32 %v2146_v9, %v2136_v34  ;;  %v3512_v9 = vld [vmem:[%s3736_s18 + $0x10] sm:$0xff] (%p1846_p9)   ;;  %3308 = vmatprep.subr.bf16.mxu1 (%p1846_p9), %v3584_v52 }
 0x43a   : >> { %v2159_v1 = vadd.f32 %v2157_v15, %v2147_v44  ;;  %v2160_v25 = vadd.f32 %v2158_v11, %v2148_v50 }
 0x43b   : > { %3309 = vmatpush3.bf16.msra.mxu1 (%p1846_p9), %v3512_v9 }
 0x43c   : >> { %v2171_v57 = vadd.f32 %v2169_v51, %v2159_v1  ;;  %v2172_v61 = vadd.f32 %v2170_v53, %v2160_v25  ;;  %3310 = vmatprep.subr.bf16.mxu1 (%p1846_p9), %v3584_v52 }
 0x43e   : >> { %v2183_v12 = vadd.f32 %v2181_v62, %v2171_v57  ;;  %v2184_v21 = vadd.f32 %v2182_v63, %v2172_v61 }
 0x43f   : > { %3311 = vmatpush3.bf16.msra.mxu1 (%p1846_p9), %v3513_v46 }
 0x440   : >> { %v2195_v24 = vadd.f32 %v2193_v3, %v2183_v12  ;;  %v2196_v18 = vadd.f32 %v2194_v28, %v2184_v21  ;;  %3312 = vmatprep.subr.bf16.mxu1 (%p1846_p9), %v3584_v52 }
 0x442   : >> { %v2207_v19 = vadd.f32 %v2205_v0, %v2195_v24  ;;  %v2208_v60 = vadd.f32 %v2206_v22, %v2196_v18 }
 0x443   : > { %3313 = vmatpush3.bf16.msra.mxu1 (%p1846_p9), %v3514_v41 }
 0x444   : >> { %v2219_v2 = vadd.f32 %v2217_v29, %v2207_v19  ;;  %v2220_v35 = vadd.f32 %v2218_v33, %v2208_v60  ;;  %3314 = vmatprep.subr.bf16.mxu1 (%p1846_p9), %v3584_v52 }
 0x445   : > { %1848 = sbr.rel (!%p1846_p9) target bundleno = 1024 (0x400), region = 262 }
 0x446   : >> { %v2225_v10 = vadd.f32 %v4111_v49, %v2219_v2  ;;  %v2226_v23 = vadd.f32 %v4111_v49, %v2220_v35  ;;  %v3517_v49 = vld [vmem:[%s3736_s18 + $0x38] sm:$0xff] (%p1846_p9)  }
 0x447   : > { %3315 = vmatpush3.bf16.msra.mxu1 (%p1846_p9), %v3515_v5 }
 0x448   : >> { %vm2227_vm2 = vcmp.ge.f32.partialorder %v2225_v10, 0.0  ;;  %vm2228_vm3 = vcmp.ge.f32.partialorder %v2226_v23, 0.0  ;;  %v2233_v6 = vmul.f32 %v4114_v47, %v2225_v10  ;;  %v2234_v45 = vmul.f32 %v4114_v47, %v2226_v23  ;;  %3316 = vmatprep.subr.bf16.mxu1 (%p1846_p9), %v3584_v52 }
 0x44a   : >> { %v2235_v32 = vsel %vm2227_vm2, %v2225_v10, %v2233_v6  ;;  %v2236_v7 = vsel %vm2228_vm3, %v2226_v23, %v2234_v45 }
 0x44b   : >> { %2238 = vst [vmem:[%s2237_s26] sm:$0xff] %v2235_v32  ;;  %2239 = vst [vmem:[%s2237_s26 + $0x8] sm:$0xff] %v2236_v7  ;;  %3317 = vmatpush3.bf16.msra.mxu1 (%p1846_p9), %v3516_v48 }
 0x44c   : > { %3318 = vmatprep.subr.bf16.mxu1 %v3584_v52  ;;  %s4405_s15 = sld [smem:[#allocation24_spill]] (!%p3064_p10)  ;;  %vm3587_vm4 = vmmov (!%p3064_p10), 0   ;;  %s4406_s25 = sld [smem:[#allocation22_spill]] (!%p3064_p10) }
 0x44d   : > { %s4407_s18 = sld [smem:[#allocation23_spill]] (!%p3064_p10)  ;;  %s4408_s19 = sld [smem:[#allocation25_spill]] (!%p3064_p10) }
 0x44f   : > { %3319 = vmatpush3.bf16.msra.mxu1 %v3517_v49 }
 0x452   : > { %v2240_v47 = vld [vmem:[#allocation6] sm:$0xff]  ;;  %v2241_v20 = vld [vmem:[#allocation6 + $0x8] sm:$0xff]  ;;  %v2242_v42 = vld [vmem:[#allocation6 + $0x10] sm:$0xff] }
 0x453   : > { %v2266_v15 = vpack.c.bf16 %v2241_v20, %v2240_v47  ;;  %v2243_v36 = vld [vmem:[#allocation6 + $0x18] sm:$0xff]  ;;  %v2244_v11 = vld [vmem:[#allocation6 + $0x20] sm:$0xff]  ;;  %v2245_v38 = vld [vmem:[#allocation6 + $0x28] sm:$0xff] }
 0x454   : > { %v2267_v34 = vpack.c.bf16 %v2243_v36, %v2242_v42  ;;  %v2268_v31 = vpack.c.bf16 %v2245_v38, %v2244_v11  ;;  %v2246_v4 = vld [vmem:[#allocation6 + $0x30] sm:$0xff]  ;;  %v2247_v44 = vld [vmem:[#allocation6 + $0x38] sm:$0xff]  ;;  %v2248_v51 = vld [vmem:[#allocation6 + $0x40] sm:$0xff] }
 0x455   : > { %3321 = vmatmul.mubr.bf16.vlgmr.msra.gmra.mrb[20].mxu1 %v2266_v15  ;;  %v2269_v50 = vpack.c.bf16 %v2247_v44, %v2246_v4  ;;  %v2249_v53 = vld [vmem:[#allocation6 + $0x48] sm:$0xff]  ;;  %v3519_v41 = vld [vmem:[%s4405_s15 + $0x8] sm:$0xff] (!%p3064_p10)   ;;  %v3520_v5 = vld [vmem:[%s4405_s15 + $0x10] sm:$0xff] (!%p3064_p10)  }
 0x456   : > { %3324 = vmatprep.mubr.msk.bf16.mxu1 %vm3585_vm1, %v3584_v52  ;;  %v2270_v58 = vpack.c.bf16 %v2249_v53, %v2248_v51  ;;  %v3521_v48 = vld [vmem:[%s4405_s15 + $0x18] sm:$0xff] (!%p3064_p10)   ;;  %v3522_v49 = vld [vmem:[%s4405_s15 + $0x20] sm:$0xff] (!%p3064_p10)   ;;  %v3523_v47 = vld [vmem:[%s4405_s15 + $0x28] sm:$0xff] (!%p3064_p10)  }
 0x457   : > { %v3524_v20 = vld [vmem:[%s4405_s15 + $0x30] sm:$0xff] (!%p3064_p10)   ;;  %v3525_v15 = vld [vmem:[%s4405_s15 + $0x38] sm:$0xff] (!%p3064_p10)  }
 0x45d   : > { %3325 = vmatmul.mubr.bf16.gmra.mrb[24].mxu1 %v2267_v34 }
 0x45e   : > { %3328 = vmatprep.mubr.msk.bf16.mxu1 %vm3585_vm1, %v3584_v52 }
 0x465   : > { %3329 = vmatmul.mubr.bf16.gmra.mrb[28].mxu1 %v2268_v31 }
 0x466   : > { %3332 = vmatprep.mubr.msk.bf16.mxu1 %vm3585_vm1, %v3584_v52 }
 0x46d   : > { %3333 = vmatmul.mubr.bf16.gmra.mrb[32].mxu1 %v2269_v50 }
 0x46e   : > { %3336 = vmatprep.mubr.msk.bf16.mxu1 %vm3585_vm1, %v3584_v52 }
 0x475   : > { %3337 = vmatmul.mubr.bf16.gmra.mrb[36].mxu1 %v2270_v58 }
 0x528   : > { %v2358_v1 = vpop.f32.mrb[20].mxu1 }
 0x529   : > { %v2359_v25 = vadd.f32 %v3055_v54, %v2358_v1  ;;  %v3322_v62 = vpop.f32.mrb[21].mxu1 }
 0x52a   : > { %v2361_v63 = vpop.f32.mrb[22].mxu1 }
 0x52b   : > { %v2397_v3 = vadd.f32 %v2359_v25, %v3875_v13  ;;  %v2362_v17 = vadd.f32 %v3055_v54, %v2361_v63  ;;  %v3323_v57 = vpop.f32.mrb[23].mxu1 }
 0x52c   : > { %v3065_v57 = vld [vmem:[%s4406_s25] ss:$0 sm:$0xff] (!%p3064_p10) }
 0x52d   : > { %2407 = vst [vmem:[#allocation4] sm:$0xff] %v2397_v3  ;;  %v2398_v61 = vadd.f32 %v2362_v17, %v3880_v16 }
 0x52f   : > { %2408 = vst [vmem:[#allocation4 + $0x8] sm:$0xff] %v2398_v61 }
 0x530   : > { %v2366_v28 = vpop.f32.mrb[24].mxu1 }
 0x531   : > { %v2367_v37 = vadd.f32 %v3055_v54, %v2366_v28  ;;  %v3326_v52 = vpop.f32.mrb[25].mxu1 }
 0x532   : > { %v2369_v55 = vpop.f32.mrb[26].mxu1 }
 0x533   : > { %v2399_v12 = vadd.f32 %v2367_v37, %v3896_v26  ;;  %v2370_v21 = vadd.f32 %v3055_v54, %v2369_v55  ;;  %v3327_v0 = vpop.f32.mrb[27].mxu1  ;;  %v3066_v55 = vld [vmem:[%s4407_s18] ss:$0 sm:$0xff] (!%p3064_p10) }
 0x535   : > { %2409 = vst [vmem:[#allocation4 + $0x10] sm:$0xff] %v2399_v12  ;;  %v2400_v22 = vadd.f32 %v2370_v21, %v3904_v30 }
 0x537   : > { %2410 = vst [vmem:[#allocation4 + $0x18] sm:$0xff] %v2400_v22 }
 0x538   : > { %v2374_v24 = vpop.f32.mrb[28].mxu1 }
 0x539   : > { %v2375_v13 = vadd.f32 %v3055_v54, %v2374_v24  ;;  %v3330_v18 = vpop.f32.mrb[29].mxu1  ;;  %v3067_v24 = vld [vmem:[%s4408_s19] ss:$0 sm:$0xff] (!%p3064_p10) }
 0x53a   : > { %v2377_v29 = vpop.f32.mrb[30].mxu1 }
 0x53b   : > { %v4294_v33 = vadd.f32 %v2375_v13, %v3916_v40  ;;  %v2378_v16 = vadd.f32 %v3055_v54, %v2377_v29  ;;  %v3331_v19 = vpop.f32.mrb[31].mxu1 }
 0x53d   : > { %2411 = vst [vmem:[#allocation4 + $0x20] sm:$0xff] %v4294_v33  ;;  %v4298_v60 = vadd.f32 %v2378_v16, %v3922_v43  ;;  %2423 = vadd.xlane.f32.xlu0 (!%p3064_p10), %v4294_v33 }
 0x53f   : > { %2412 = vst [vmem:[#allocation4 + $0x28] sm:$0xff] %v4298_v60 }
 0x540   : > { %v2382_v26 = vpop.f32.mrb[32].mxu1 }
 0x541   : > { %v2383_v2 = vadd.f32 %v3055_v54, %v2382_v26  ;;  %v3334_v30 = vpop.f32.mrb[33].mxu1  ;;  %2425 = vadd.xlane.f32.xlu0 (!%p3064_p10), %v4298_v60 }
 0x542   : > { %v2385_v35 = vpop.f32.mrb[34].mxu1 }
 0x543   : > { %v2403_v10 = vadd.f32 %v2383_v2, %v3937_v56  ;;  %v2386_v23 = vadd.f32 %v3055_v54, %v2385_v35  ;;  %v3335_v6 = vpop.f32.mrb[35].mxu1  ;;  %v2429_v56 = vmul.f32 (!%p3064_p10), %v4294_v33, %v4294_v33 }
 0x545   : > { %2413 = vst [vmem:[#allocation4 + $0x30] sm:$0xff] %v2403_v10  ;;  %v2404_v40 = vadd.f32 %v2386_v23, %v3943_v59  ;;  %2431 = vadd.xlane.f32.xlu1 (!%p3064_p10), %v2429_v56  ;;  %v2430_v59 = vmul.f32 (!%p3064_p10), %v4298_v60, %v4298_v60 }
 0x547   : > { %2414 = vst [vmem:[#allocation4 + $0x38] sm:$0xff] %v2404_v40 }
 0x548   : > { %v2390_v45 = vpop.f32.mrb[36].mxu1 }
 0x549   : > { %v2391_v32 = vadd.f32 %v3055_v54, %v2390_v45  ;;  %v3338_v7 = vpop.f32.mrb[37].mxu1  ;;  %2420 = sbr.rel (%p3064_p10) target bundleno = 1739 (0x6cb), region = 159  ;;  %2433 = vadd.xlane.f32.xlu1 (!%p3064_p10), %v2430_v59 }
 0x54a   : > { %v2393_v27 = vpop.f32.mrb[38].mxu1 }
 0x54b   : > { %v2405_v43 = vadd.f32 %v2391_v32, %v3961_v8  ;;  %v2394_v39 = vadd.f32 %v3055_v54, %v2393_v27  ;;  %v3339_v9 = vpop.f32.mrb[39].mxu1  ;;  %v3518_v8 = vld [vmem:[%s4405_s15] sm:$0xff] (!%p3064_p10)  }
 0x54d   : > { %2415 = vst [vmem:[#allocation4 + $0x40] sm:$0xff] %v2405_v43  ;;  %v2406_v46 = vadd.f32 %v2394_v39, %v3970_v14  ;;  %v3586_v14 = vmov (!%p3064_p10), 0.0  }
 0x54e   : > { %3340 = vmatprep.subr.bf16.mxu0 (!%p3064_p10), %v3586_v14  ;;  %3356 = vmatprep.mubr.msk.bf16.mxu0 (!%p3064_p10), %vm3587_vm4, %v3586_v14 }
 0x54f   : > { %2416 = vst [vmem:[#allocation4 + $0x48] sm:$0xff] %v2406_v46  ;;  %3341 = vmatpush3.bf16.msra.mxu0 (!%p3064_p10), %v3518_v8 }
 0x550   : > { %3342 = vmatprep.subr.bf16.mxu0 %v3586_v14 }
 0x553   : > { %3343 = vmatpush3.bf16.msra.mxu0 %v3519_v41 }
 0x554   : > { %3344 = vmatprep.subr.bf16.mxu0 %v3586_v14 }
 0x557   : > { %3345 = vmatpush3.bf16.msra.mxu0 %v3520_v5 }
 0x558   : > { %3346 = vmatprep.subr.bf16.mxu0 %v3586_v14 }
 0x55b   : > { %3347 = vmatpush3.bf16.msra.mxu0 %v3521_v48 }
 0x55c   : > { %3348 = vmatprep.subr.bf16.mxu0 %v3586_v14 }
 0x55f   : > { %3349 = vmatpush3.bf16.msra.mxu0 %v3522_v49 }
 0x560   : > { %3350 = vmatprep.subr.bf16.mxu0 %v3586_v14 }
 0x563   : > { %3351 = vmatpush3.bf16.msra.mxu0 %v3523_v47 }
 0x564   : > { %3352 = vmatprep.subr.bf16.mxu0 %v3586_v14 }
 0x567   : > { %3353 = vmatpush3.bf16.msra.mxu0 %v3524_v20 }
 0x568   : > { %3354 = vmatprep.subr.bf16.mxu0 %v3586_v14 }
 0x56b   : > { %3355 = vmatpush3.bf16.msra.mxu0 %v3525_v15 }
 0x5ca   : > { %v2424_v42 = vpop.xlane.xlu0 %2423 }
 0x5cb   : > { %v2427_v36 = vmul.f32 0.03125, %v2424_v42 }
 0x5cd   : > { %v2437_v11 = vmul.f32 %v2427_v36, %v2427_v36  ;;  %v2443_v63 = vsub.f32 %v4294_v33, %v2427_v36 }
 0x5ce   : > { %v2426_v31 = vpop.xlane.xlu0 %2425 }
 0x5cf   : > { %v2428_v44 = vmul.f32 0.03125, %v2426_v31 }
 0x5d1   : > { %v2438_v53 = vmul.f32 %v2428_v44, %v2428_v44  ;;  %v2444_v61 = vsub.f32 %v4298_v60, %v2428_v44 }
 0x5d2   : > { %v2432_v34 = vpop.xlane.xlu1 %2431 }
 0x5d3   : > { %v2435_v38 = vmul.f32 0.03125, %v2432_v34 }
 0x5d5   : > { %v2439_v4 = vsub.f32 %v2435_v38, %v2437_v11 }
 0x5d6   : > { %v2434_v50 = vpop.xlane.xlu1 %2433 }
 0x5d7   : > { %v2441_v51 = vmax.f32 %v2439_v4, 0.0  ;;  %v2436_v58 = vmul.f32 0.03125, %v2434_v50 }
 0x5d9   : > { %v2445_v54 = vadd.f32 1e-05, %v2441_v51  ;;  %v2440_v1 = vsub.f32 %v2436_v58, %v2438_v53 }
 0x5db   : > { %3526 = vrsqrt.f32 %v2445_v54  ;;  %v2442_v25 = vmax.f32 %v2440_v1, 0.0 }
 0x5dd   : > { %v2446_v62 = vadd.f32 1e-05, %v2442_v25 }
 0x5df   : > { %3528 = vrsqrt.f32 %v2446_v62 }
 0x5e5   : > { %v3527_v3 = vpop.eup %3526 }
 0x5e6   : > { %v2449_v17 = vmul.f32 %v3527_v3, %v2443_v63 }
 0x5e8   : > { %v2457_v52 = vmul.f32 %v3065_v57, %v2449_v17 }
 0x5e9   : > { %v3529_v28 = vpop.eup %3528 }
 0x5ea   : > { %v2450_v37 = vmul.f32 %v3529_v28, %v2444_v61  ;;  %v2465_v21 = vadd.f32 %v3066_v55, %v2457_v52 }
 0x5ec   : > { %v2458_v12 = vmul.f32 %v3065_v57, %v2450_v37 }
 0x5ee   : > { %v2466_v0 = vadd.f32 %v3066_v55, %v2458_v12 }
 0x5f0   : > { %v2483_v22 = vpack.c.bf16 %v2466_v0, %v2465_v21 }
 0x5f2   : > { %3357 = vmatmul.mubr.bf16.vlgmr.msra.gmra.mrb[0].mxu0 %v2483_v22 }
 0x6c5   : > { %v2573_v13 = vpop.f32.mrb[0].mxu0 }
 0x6c6   : > { %v2574_v18 = vadd.f32 %v3067_v24, %v2573_v13  ;;  %v3358_v29 = vpop.f32.mrb[1].mxu0 }
 0x6c7   : > { %v2576_v33 = vpop.f32.mrb[2].mxu0 }
 0x6c8   : > { %2580 = vst [vmem:[%s3759_s20] sm:$0xff] %v2574_v18  ;;  %v2577_v16 = vadd.f32 %v3067_v24, %v2576_v33  ;;  %v3359_v19 = vpop.f32.mrb[3].mxu0 }
 0x6ca   : > { %2581 = vst [vmem:[%s3759_s20 + $0x8] sm:$0xff] %v2577_v16 }
 0x6cb PF: > { %s4409_s23 = sld [smem:[#allocation14_spill]]  ;;  %s4410_s21 = sld [smem:[#allocation12_spill]] }
 0x6cc   : > { %s4411_s22 = sld [smem:[#allocation13_spill]]  ;;  %s4413_s24 = sld [smem:[#allocation16_spill]] }
 0x6d1   : > { %s26_s25 = sadd.s32 1, %s4409_s23   ;;  %s4412_s23 = sld [smem:[#allocation15_spill]] }
 0x6d2   : > { %p23_p11 = scmp.ge.s32.totalorder %s26_s25, 6  }
 0x6d4   :  { %25 = sbr.rel (!%p23_p11) target bundleno = 10 (0xa), region = 273 }
 0x6db   :  { %2612 = vsyncmov [#allocation7] }
 0x6de   :  { %s2613_s20 = vpop.sfrf %2612 }
 0x6df   :  { %p3078_p12 = scmp.ne.s32.totalorder %s2613_s20, 0 }
 0x6e1   :  { %2617 = shalt.err (%p3078_p12)  }
 0x6e2   :  { %2619 = vsyncmov [#allocation7 + $0x1] }
 0x6e5   :  { %s2620_s6 = vpop.sfrf %2619 }
 0x6e6   :  { %p3079_p13 = scmp.ne.s32.totalorder %s2620_s6, 0 }
 0x6e8   :  { %2624 = shalt.err (%p3079_p13)  }

</bundles_post_ra>
